<compile_context>
chip_gen: v6e
topology: v6e:2x2x1
jax: 0.10.0
libtpu: 0.0.40
codegen_flags: <defaults>
</compile_context>

<pallas_src>
import jax
import jax.numpy as jnp
from jax.experimental import pallas as pl
from jax.experimental.pallas import tpu as pltpu


def _conv1x1_kernel(w_ref, x_ref, o_ref):
    # w_ref: (tco, C_in)    -- weight block (bf16), resident across the batch axis
    # x_ref: (1, C_in, HW)  -- pixel block (bf16) for one batch element
    # o_ref: (1, tco, HW)   -- f32 output block
    o_ref[0] = jnp.dot(
        w_ref[...], x_ref[0], preferred_element_type=jnp.float32
    ).astype(o_ref.dtype)


def _device_kind() -> str:
    try:
        return jax.devices()[0].device_kind.lower()
    except Exception:
        return ""


def conv1x1_pallas(x_nchw, weight_oihw, *, compute_dtype=jnp.bfloat16,
                   n_co_blocks=None):
    """1x1 conv, stride 1, no bias, computed as W @ X in NCHW-native layout.

    x_nchw:      (N, C_in, H, W) float32
    weight_oihw: (C_out, C_in, 1, 1) float32
    returns:     (N, C_out, H, W) float32
    """
    N, C_in, H, W = x_nchw.shape
    C_out = weight_oihw.shape[0]
    HW = H * W

    is_v7 = "v7" in _device_kind()

    if n_co_blocks is None:
        # v7x: 4 blocks -> 2 grid steps per TensorCore (pipeline depth for the W DMA
        # and output writeback).  v5e/v6e: 2 blocks (extra steps only add overhead).
        n_co_blocks = 4 if is_v7 else 2
    assert C_out % n_co_blocks == 0, "C_out must divide evenly into output blocks"
    tco = C_out // n_co_blocks

    # NCHW-native: no transposes, only reshapes (free metadata changes).
    # bf16 inputs halve HBM traffic and hit the fast MXU path; accumulation stays f32.
    x_mat = x_nchw.reshape(N, C_in, HW).astype(compute_dtype)       # (N, C_in, H*W)
    w_mat = weight_oihw.reshape(C_out, C_in).astype(compute_dtype)  # (C_out, C_in)

    in_itemsize = jnp.dtype(compute_dtype).itemsize
    out_itemsize = jnp.dtype(x_nchw.dtype).itemsize
    flops = 2 * N * C_out * C_in * HW
    bytes_accessed = (
        (x_mat.size + w_mat.size) * in_itemsize + N * C_out * HW * out_itemsize
    )

    if is_v7:
        dim_sems = (getattr(pltpu, "CORE_PARALLEL", "parallel"), "arbitrary")
    else:
        dim_sems = ("parallel", "parallel")

    out = pl.pallas_call(
        _conv1x1_kernel,
        out_shape=jax.ShapeDtypeStruct((N, C_out, HW), x_nchw.dtype),
        grid_spec=pltpu.PrefetchScalarGridSpec(
            num_scalar_prefetch=0,
            # C_out-block axis first (the only axis with extent > 1 when N == 1).
            grid=(n_co_blocks, N),
            in_specs=[
                # Weight block: depends only on j -> resident across the batch axis,
                # each C_out slice DMA'd exactly once.
                pl.BlockSpec((tco, C_in), lambda j, b: (j, 0)),
                # Pixel block for batch element b.
                pl.BlockSpec((1, C_in, HW), lambda j, b: (b, 0, 0)),
            ],
            out_specs=pl.BlockSpec((1, tco, HW), lambda j, b: (b, j, 0)),
        ),
        compiler_params=pltpu.CompilerParams(
            dimension_semantics=dim_sems,
        ),
        cost_estimate=pl.CostEstimate(
            flops=flops, transcendentals=0, bytes_accessed=bytes_accessed
        ),
    )(w_mat, x_mat)

    return out.reshape(N, C_out, H, W)


if __name__ == "__main__":
    key = jax.random.PRNGKey(0)
    kx, kw = jax.random.split(key)

    # Shapes implied by the module: input (1, 256, 28, 28), Conv2d(256 -> 1024, 1x1, no bias)
    N, C_in, H, W = 1, 256, 28, 28
    C_out = 1024

    x = jax.random.normal(kx, (N, C_in, H, W), dtype=jnp.float32)
    # Deterministic synthetic weight (kaiming-like scale)
    weight = jax.random.normal(kw, (C_out, C_in, 1, 1), dtype=jnp.float32) * (
        1.0 / jnp.sqrt(C_in)
    )

    y = conv1x1_pallas(x, weight)
    y = jax.block_until_ready(y)

    # Sanity check against a plain-JAX f32 reference.  Tolerance is loosened because
    # the kernel computes with bf16 inputs (f32 accumulation), per the perf review.
    ref = jnp.einsum("nchw,oc->nohw", x, weight.reshape(C_out, C_in))
    assert y.shape == (N, C_out, H, W)
    assert y.dtype == jnp.float32
    assert jnp.allclose(y, ref, atol=5e-2, rtol=5e-2), (
        "max abs err = %f" % float(jnp.max(jnp.abs(y - ref)))
    )

    print("KERNEL_OK")
</pallas_src>

<mosaic_0001>
module attributes {stable_mosaic.version = 11 : i64} {
  func.func @_conv1x1_kernel(%arg0: i32, %arg1: i32, %arg2: memref<512x256xbf16, #tpu.memory_space<vmem>>, %arg3: memref<1x256x784xbf16, #tpu.memory_space<vmem>>, %arg4: memref<1x512x784xf32, #tpu.memory_space<vmem>>) attributes {dimension_semantics = [#tpu.dimension_semantics<parallel>, #tpu.dimension_semantics<parallel>], iteration_bounds = array<i64: 2, 1>, scalar_prefetch = 0 : i64, scratch_operands = 0 : i64, tpu.core_type = #tpu.core_type<tc>, window_params = [{transform_indices = @transform_0, window_bounds = array<i64: 512, 256>}, {transform_indices = @transform_1, window_bounds = array<i64: 1, 256, 784>}, {transform_indices = @transform_2, window_bounds = array<i64: 1, 512, 784>}]} {
    %c0 = arith.constant 0 : index
    %c0_0 = arith.constant 0 : index
    %0 = vector.load %arg2[%c0, %c0_0] : memref<512x256xbf16, #tpu.memory_space<vmem>>, vector<512x256xbf16>
    %c0_1 = arith.constant 0 : index
    %c0_2 = arith.constant 0 : index
    %c0_3 = arith.constant 0 : index
    %1 = vector.load %arg3[%c0_1, %c0_2, %c0_3] : memref<1x256x784xbf16, #tpu.memory_space<vmem>>, vector<1x256x784xbf16>
    %2 = vector.shape_cast %1 : vector<1x256x784xbf16> to vector<256x784xbf16>
    %cst = arith.constant dense<0.000000e+00> : vector<512x784xf32>
    %3 = tpu.matmul %0, %2, %cst {dimension_numbers = #tpu.dot_dimension_numbers<[1], [0], [0], [1], [0, 0, 1, 1], [], []>} : vector<512x256xbf16>, vector<256x784xbf16>, vector<512x784xf32> -> vector<512x784xf32>
    %c0_4 = arith.constant 0 : index
    %c0_5 = arith.constant 0 : index
    %c0_6 = arith.constant 0 : index
    %4 = vector.load %arg4[%c0_4, %c0_5, %c0_6] : memref<1x512x784xf32, #tpu.memory_space<vmem>>, vector<1x512x784xf32>
    %5 = vector.shape_cast %4 : vector<1x512x784xf32> to vector<512x784xf32>
    %6 = vector.shape_cast %3 : vector<512x784xf32> to vector<1x512x784xf32>
    tpu.vector_store %arg4[%c0_4, %c0_5, %c0_6], %6 {strides = array<i32>} : memref<1x512x784xf32, #tpu.memory_space<vmem>>, vector<1x512x784xf32>,
    return
  }
  func.func @transform_0(%arg0: i32, %arg1: i32) -> (i32, i32) {
    %c0_i32 = arith.constant 0 : i32
    %c0_i32_0 = arith.constant 0 : i32
    return %arg0, %c0_i32 : i32, i32
  }
  func.func @transform_1(%arg0: i32, %arg1: i32) -> (i32, i32, i32) {
    %c0_i32 = arith.constant 0 : i32
    %c0_i32_0 = arith.constant 0 : i32
    %c0_i32_1 = arith.constant 0 : i32
    return %arg1, %c0_i32, %c0_i32_0 : i32, i32, i32
  }
  func.func @transform_2(%arg0: i32, %arg1: i32) -> (i32, i32, i32) {
    %c0_i32 = arith.constant 0 : i32
    %c0_i32_0 = arith.constant 0 : i32
    return %arg1, %arg0, %c0_i32 : i32, i32, i32
  }
}

</mosaic_0001>

<bundles_post_ra>
// kernel: tpu_custom_call.1
= control target key start
LH: loop header
LB: loop body
LE: loop exit
PB: predicated region body
PF: predicated region fallthrough
CT: control target
= control target key end

     0   :  { %7 = vsyncpa [#allocation3], 0  ;;  %s5052_s0 = inlined_call_operand.hbm [shape: bf16[1024,256], index: 0, kind: input, shape index: {}]   ;;  %s5053_s1 = inlined_call_operand.vmem [shape: bf16[1,256,784], index: 1, kind: input, shape index: {}]   ;;  %s5054_s2 = inlined_call_operand.vmem [shape: f32[1,1024,784], index: 2, kind: output, shape index: {}]  }
   0x1   :  { %9 = vsyncpa [#allocation3 + $0x1], 0  ;;  %s3861_s9 = smov 0   ;;  %s3863_s10 = smov 0  }
   0x2   :  { %s3865_s11 = smov 0   ;;  %s3867_s12 = smov 0  }
   0x3   :  { %s3869_s13 = smov 0   ;;  %s3871_s14 = smov 0  }
   0x4 LB: > { %s3210_s15 = sadd.s32 4294967295, %s3840_s14   ;;  %s27_s16 = sadd.s32 1, %s3836_s13  ;;  %s3840_s14 = sphi %s3871_s14, %s15_s14   ;;  %s3836_s13 = sphi %s3869_s13, %s5062_s13   ;;  %s3832_s12 = sphi %s3867_s12, %s5061_s12   ;;  %s3828_s11 = sphi %s3865_s11, %s5060_s11   ;;  %s3824_s10 = sphi %s3863_s10, %s5059_s10   ;;  %s3820_s9 = sphi %s3861_s9, %s5058_s9  }
   0x5   : > { %p29_p0 = scmp.ge.s32.totalorder %s27_s16, 2  ;;  %s34_s17 = sadd.s32 1, %s3828_s11 }
   0x6   : > { %p41_p1 = scmp.ne.s32.totalorder %s3828_s11, %s3824_s10  ;;  %p42_p2 = scmp.eq.s32.totalorder %s3840_s14, 0 }
   0x7   : > { %s5064_s16 = smov (%p29_p0, %s27_s16), 0  ;;  %p47_p4 = scmp.ne.s32.totalorder %s3824_s10, %s3820_s9 }
   0x8   : > { %p3897_p3 = por %p42_p2, %p41_p1  ;;  %s31_s19 = ssub.s32 %s3836_s13, %s5064_s16 }
   0x9   : > { %p48_p5 = scmp.eq.s32.totalorder %s3210_s15, 0  ;;  %p32_p6 = scmp.eq.s32.totalorder %s31_s19, 0 }
   0xa   : > { %p3410_p8 = scmp.lt.s32.totalorder %s3840_s14, 2  ;;  %s133_s22 = sand.u32 1, %s3828_s11  }
   0xb   : > { %p3904_p7 = por %p48_p5, %p47_p4  ;;  %s3402_s23 = sshll.u32 %s3836_s13, 13 }
   0xc   : > { %s3910_s21 = scalar_select %p32_p6, %s3828_s11, %s34_s17  }
   0xd   : > { %s3215_s24 = sshll.u32 %s133_s22, 9  ;;  %s144_s27 = scalar_lea.hbm %s5052_s0, %s3402_s23 }
   0xe   : > { %s137_s28 = scalar_lea.vmem [#allocation2], %s3215_s24  ;;  %p3919_p9 = pnand %p3410_p8, %p3897_p3 }
   0xf   : > { %s145_s29 = sshll.u32 %s137_s28, 4  ;;  %s134_s3 = scalar_lea.sflag [#allocation3], %s133_s22  ;;  %s146_s29 = int_to_ptr.vmem [resolvable:$true] %s145_s29 }
  0x10   : > { %p3764_p10 = pneg %p3919_p9  ;;  %s3775_s4 = scalar_lea.vmem %s146_s29, 8192 }
  0x11   : > { %p3776_p11 = scmp.ne.s32.totalorder %s146_s29, %s3775_s4  ;;  %s3842_s5 = smov [#allocation2]  }
  0x12   : > { %s3780_s6 = sshll.u32 %s3842_s5, 4  ;;  %s3781_s6 = int_to_ptr.vmem [resolvable:$false] %s3780_s6 }
  0x13   : > { %p3778_p12 = pnand %p3776_p11, %p3764_p10  ;;  %s3782_s7 = scalar_lea.vmem %s3781_s6, 16384 }
  0x14   : > { %p3783_p0 = scmp.lt.s32.totalorder %s146_s29, %s3781_s6  ;;  %p3784_p1 = scmp.lt.s32.totalorder %s3782_s7, %s3775_s4 }
  0x15   : > { %p3779_p13 = pneg %p3778_p12 }
  0x16   : > { %p3785_p2 = por %p3784_p1, %p3783_p0 }
  0x18   : > { %p3786_p3 = pnand %p3785_p2, %p3779_p13 }
  0x1a   : > { %3789 = shalt.err (!%p3786_p3)
}
  0x1b   : > { %s3843_s8 = smov 128   ;;  %s3844_s9 = smov 8  }
  0x1c   : > { %3409 = dma.hbm_to_vmem [thread:$0]  (!%p3919_p9), %s144_s27, 8192, %s146_s29, %s134_s3, %s3843_s8, %s3843_s8, %s3844_s9  }
  0x1d   : > { %p3219_p4 = scmp.ge.s32.totalorder %s3840_s14, 1  ;;  %p153_p5 = scmp.lt.s32.totalorder %s3840_s14, 3 }
  0x1f   : > { %p154_p6 = pnand %p3219_p4, %p153_p5 }
  0x20   : > { %s159_s15 = sand.u32 (!%p154_p6), 1, %s3824_s10  }
  0x21   : > { %157 = sbr.rel (%p154_p6) target bundleno = 808 (0x328), region = 28  ;;  %s3220_s17 = sshll.u32 (!%p154_p6), %s159_s15, 9 }
  0x22   : > { %s160_s18 = scalar_lea.sflag (!%p154_p6), [#allocation3], %s159_s15  ;;  %s3930_s19 = scalar_lea.vmem (!%p154_p6), [#allocation2], %s3220_s17 }
  0x26   : > { %3815 = dma.done.wait (%p3904_p7), %s160_s18, 8192  }
  0x27   : > { %3817 = vsyncadd (%p3904_p7), %s160_s18, 4294959104  ;;  %v3462_v0 = vld [vmem:[%s5053_s1 + $0x18c] ss:$28 sps:$4 sm:$0xff]   ;;  %v3464_v1 = vld [vmem:[%s5053_s1 + $0x194] ss:$28 sps:$4 sm:$0xff]   ;;  %s3221_s26 = sshll.u32 %s3832_s12, 6 }
  0x28   : > { %1300 = vmatprep.subr.bf16.mxu0 %v3462_v0  ;;  %v3466_v2 = vld [vmem:[%s5053_s1 + $0x188] ss:$28 sps:$4 sm:$0xff]   ;;  %v3467_v3 = vld [vmem:[%s5053_s1 + $0x190] ss:$28 sps:$4 sm:$0xff]   ;;  %1653 = vmatprep.subr.bf16.mxu1 %v3464_v1  ;;  %v3470_v5 = vld [vmem:[%s5053_s1 + $0x15c] ss:$28 sps:$4 sm:$0xff]  }
  0x29   : > { %v3468_v4 = vld [vmem:[%s5053_s1 + $0x154] ss:$28 sps:$4 sm:$0xff]   ;;  %1301 = vmatpush1.bf16.msra.mxu0 %v3466_v2  ;;  %1654 = vmatpush1.bf16.msra.mxu1 %v3467_v3  ;;  %v3474_v8 = vld [vmem:[%s5053_s1 + $0x11c] ss:$28 sps:$4 sm:$0xff]   ;;  %v3476_v9 = vld [vmem:[%s5053_s1 + $0x124] ss:$28 sps:$4 sm:$0xff]  }
  0x2a   : > { %v3472_v6 = vld [vmem:[%s5053_s1 + $0x150] ss:$28 sps:$4 sm:$0xff]   ;;  %1302 = vmatprep.subr.bf16.mxu0 %v3468_v4  ;;  %v3473_v7 = vld [vmem:[%s5053_s1 + $0x158] ss:$28 sps:$4 sm:$0xff]   ;;  %1655 = vmatprep.subr.bf16.mxu1 %v3470_v5  ;;  %v3479_v11 = vld [vmem:[%s5053_s1 + $0x120] ss:$28 sps:$4 sm:$0xff]  }
  0x2b   : > { %v3478_v10 = vld [vmem:[%s5053_s1 + $0x118] ss:$28 sps:$4 sm:$0xff]   ;;  %v3480_v12 = vld [vmem:[%s5053_s1 + $0xe4] ss:$28 sps:$4 sm:$0xff]   ;;  %v3482_v13 = vld [vmem:[%s5053_s1 + $0xec] ss:$28 sps:$4 sm:$0xff]  }
  0x2c   : > { %v3484_v14 = vld [vmem:[%s5053_s1 + $0xe0] ss:$28 sps:$4 sm:$0xff]   ;;  %v3485_v15 = vld [vmem:[%s5053_s1 + $0xe8] ss:$28 sps:$4 sm:$0xff]   ;;  %v3488_v17 = vld [vmem:[%s5053_s1 + $0xb4] ss:$28 sps:$4 sm:$0xff]  }
  0x2d   : > { %1303 = vmatpush1.bf16.msra.mxu0 %v3472_v6  ;;  %1656 = vmatpush1.bf16.msra.mxu1 %v3473_v7  ;;  %v3486_v16 = vld [vmem:[%s5053_s1 + $0xac] ss:$28 sps:$4 sm:$0xff]   ;;  %v3492_v20 = vld [vmem:[%s5053_s1 + $0x74] ss:$28 sps:$4 sm:$0xff]   ;;  %v3494_v21 = vld [vmem:[%s5053_s1 + $0x7c] ss:$28 sps:$4 sm:$0xff]  }
  0x2e   : > { %1304 = vmatprep.subr.bf16.mxu0 %v3474_v8  ;;  %1657 = vmatprep.subr.bf16.mxu1 %v3476_v9  ;;  %v3490_v18 = vld [vmem:[%s5053_s1 + $0xa8] ss:$28 sps:$4 sm:$0xff]   ;;  %v3491_v19 = vld [vmem:[%s5053_s1 + $0xb0] ss:$28 sps:$4 sm:$0xff]   ;;  %v3497_v23 = vld [vmem:[%s5053_s1 + $0x78] ss:$28 sps:$4 sm:$0xff]  }
  0x2f   : > { %v3496_v22 = vld [vmem:[%s5053_s1 + $0x70] ss:$28 sps:$4 sm:$0xff]   ;;  %v3498_v24 = vld [vmem:[%s5053_s1 + $0x3c] ss:$28 sps:$4 sm:$0xff]   ;;  %v3500_v25 = vld [vmem:[%s5053_s1 + $0x44] ss:$28 sps:$4 sm:$0xff]  }
  0x30   : > { %v3502_v26 = vld [vmem:[%s5053_s1 + $0x38] ss:$28 sps:$4 sm:$0xff]   ;;  %v3503_v27 = vld [vmem:[%s5053_s1 + $0x40] ss:$28 sps:$4 sm:$0xff]   ;;  %v3506_v29 = vld [vmem:[%s5053_s1 + $0xc] ss:$28 sps:$4 sm:$0xff]  }
  0x31   : > { %1305 = vmatpush1.bf16.msra.mxu0 %v3478_v10  ;;  %1658 = vmatpush1.bf16.msra.mxu1 %v3479_v11  ;;  %v3504_v28 = vld [vmem:[%s5053_s1 + $0x4] ss:$28 sps:$4 sm:$0xff]   ;;  %v3510_v32 = vld [vmem:[%s5053_s1 + $0x34c] ss:$28 sps:$4 sm:$0xff]   ;;  %v3512_v33 = vld [vmem:[%s5053_s1 + $0x354] ss:$28 sps:$4 sm:$0xff]  }
  0x32   : > { %1306 = vmatprep.subr.bf16.mxu0 %v3480_v12  ;;  %1659 = vmatprep.subr.bf16.mxu1 %v3482_v13  ;;  %v3508_v30 = vld [vmem:[%s5053_s1] ss:$28 sps:$4 sm:$0xff]   ;;  %v3509_v31 = vld [vmem:[%s5053_s1 + $0x8] ss:$28 sps:$4 sm:$0xff]   ;;  %v3515_v35 = vld [vmem:[%s5053_s1 + $0x350] ss:$28 sps:$4 sm:$0xff]  }
  0x33   : > { %v3514_v34 = vld [vmem:[%s5053_s1 + $0x348] ss:$28 sps:$4 sm:$0xff]   ;;  %v3516_v36 = vld [vmem:[%s5053_s1 + $0x314] ss:$28 sps:$4 sm:$0xff]   ;;  %v3518_v37 = vld [vmem:[%s5053_s1 + $0x31c] ss:$28 sps:$4 sm:$0xff]  }
  0x34   : > { %v3520_v38 = vld [vmem:[%s5053_s1 + $0x310] ss:$28 sps:$4 sm:$0xff]   ;;  %v3521_v39 = vld [vmem:[%s5053_s1 + $0x318] ss:$28 sps:$4 sm:$0xff]   ;;  %v3524_v41 = vld [vmem:[%s5053_s1 + $0x2e4] ss:$28 sps:$4 sm:$0xff]  }
  0x35   : > { %1307 = vmatpush1.bf16.msra.mxu0 %v3484_v14  ;;  %1660 = vmatpush1.bf16.msra.mxu1 %v3485_v15  ;;  %v3522_v40 = vld [vmem:[%s5053_s1 + $0x2dc] ss:$28 sps:$4 sm:$0xff]   ;;  %v3528_v44 = vld [vmem:[%s5053_s1 + $0x2a4] ss:$28 sps:$4 sm:$0xff]   ;;  %v3530_v45 = vld [vmem:[%s5053_s1 + $0x2ac] ss:$28 sps:$4 sm:$0xff]  }
  0x36   : > { %1308 = vmatprep.subr.bf16.mxu0 %v3486_v16  ;;  %1661 = vmatprep.subr.bf16.mxu1 %v3488_v17  ;;  %v3526_v42 = vld [vmem:[%s5053_s1 + $0x2d8] ss:$28 sps:$4 sm:$0xff]   ;;  %v3527_v43 = vld [vmem:[%s5053_s1 + $0x2e0] ss:$28 sps:$4 sm:$0xff]   ;;  %v3533_v47 = vld [vmem:[%s5053_s1 + $0x2a8] ss:$28 sps:$4 sm:$0xff]  }
  0x37   : > { %v3532_v46 = vld [vmem:[%s5053_s1 + $0x2a0] ss:$28 sps:$4 sm:$0xff]   ;;  %v3558_v48 = vld [vmem:[%s3930_s19 + $0x4] ss:$8 sps:$4 sm:$0xff]   ;;  %v3536_v50 = vld [vmem:[%s5053_s1 + $0x274] ss:$28 sps:$4 sm:$0xff]  }
  0x38   : > { %v3534_v49 = vld [vmem:[%s5053_s1 + $0x26c] ss:$28 sps:$4 sm:$0xff]   ;;  %1332 = vmatprep.mubr.bf16.mxu0 %v3558_v48  ;;  %1685 = vmatprep.mubr.bf16.mxu1 %v3558_v48  ;;  %v3540_v53 = vld [vmem:[%s5053_s1 + $0x234] ss:$28 sps:$4 sm:$0xff]   ;;  %v3542_v54 = vld [vmem:[%s5053_s1 + $0x23c] ss:$28 sps:$4 sm:$0xff]  }
  0x39   : > { %1309 = vmatpush1.bf16.msra.mxu0 %v3490_v18  ;;  %1662 = vmatpush1.bf16.msra.mxu1 %v3491_v19  ;;  %v3538_v51 = vld [vmem:[%s5053_s1 + $0x268] ss:$28 sps:$4 sm:$0xff]   ;;  %v3539_v52 = vld [vmem:[%s5053_s1 + $0x270] ss:$28 sps:$4 sm:$0xff]   ;;  %v3545_v56 = vld [vmem:[%s5053_s1 + $0x238] ss:$28 sps:$4 sm:$0xff]  }
  0x3a   : > { %1310 = vmatprep.subr.bf16.mxu0 %v3492_v20  ;;  %1663 = vmatprep.subr.bf16.mxu1 %v3494_v21  ;;  %v3544_v55 = vld [vmem:[%s5053_s1 + $0x230] ss:$28 sps:$4 sm:$0xff]   ;;  %v3546_v57 = vld [vmem:[%s5053_s1 + $0x1fc] ss:$28 sps:$4 sm:$0xff]   ;;  %v3548_v58 = vld [vmem:[%s5053_s1 + $0x204] ss:$28 sps:$4 sm:$0xff]  }
  0x3b   : > { %v3550_v59 = vld [vmem:[%s5053_s1 + $0x1f8] ss:$28 sps:$4 sm:$0xff]   ;;  %v3551_v60 = vld [vmem:[%s5053_s1 + $0x200] ss:$28 sps:$4 sm:$0xff]   ;;  %v3554_v62 = vld [vmem:[%s5053_s1 + $0x1cc] ss:$28 sps:$4 sm:$0xff]  }
  0x3c   : > { %v3552_v61 = vld [vmem:[%s5053_s1 + $0x1c4] ss:$28 sps:$4 sm:$0xff]   ;;  %v3563_v1 = vld [vmem:[%s5053_s1 + $0x19c] ss:$28 sps:$4 sm:$0xff]   ;;  %v3845_v5 = vmov 0   ;;  %p203_p7 = scmp.lt.s32.totalorder %s3221_s26, 127 }
  0x3d   : > { %1311 = vmatpush1.bf16.msra.mxu0 %v3496_v22  ;;  %1664 = vmatpush1.bf16.msra.mxu1 %v3497_v23  ;;  %v3556_v63 = vld [vmem:[%s5053_s1 + $0x1c0] ss:$28 sps:$4 sm:$0xff]   ;;  %v3557_v0 = vld [vmem:[%s5053_s1 + $0x1c8] ss:$28 sps:$4 sm:$0xff]   ;;  %v3561_v3 = vld [vmem:[%s5053_s1 + $0x198] ss:$28 sps:$4 sm:$0xff]  }
  0x3e   : > { %1312 = vmatprep.subr.bf16.mxu0 %v3498_v24  ;;  %1665 = vmatprep.subr.bf16.mxu1 %v3500_v25  ;;  %v3560_v2 = vld [vmem:[%s3930_s19] ss:$8 sps:$4 sm:$0xff]   ;;  %v3565_v6 = vld [vmem:[%s3930_s19 + $0x14] ss:$8 sps:$4 sm:$0xff]   ;;  %v3567_v11 = vld [vmem:[%s3930_s19 + $0x10] ss:$8 sps:$4 sm:$0xff]  }
  0x3f   : > { %v3564_v4 = vld [vmem:[%s5053_s1 + $0x1a0] ss:$28 sps:$4 sm:$0xff]   ;;  %v3574_v9 = vld [vmem:[%s5053_s1 + $0x168] ss:$28 sps:$4 sm:$0xff]   ;;  %v3584_v14 = vld [vmem:[%s5053_s1 + $0x130] ss:$28 sps:$4 sm:$0xff]  }
  0x40   : > { %v3573_v7 = vld [vmem:[%s5053_s1 + $0x164] ss:$28 sps:$4 sm:$0xff]   ;;  %v3583_v10 = vld [vmem:[%s5053_s1 + $0x12c] ss:$28 sps:$4 sm:$0xff]   ;;  %v3593_v15 = vld [vmem:[%s5053_s1 + $0xf4] ss:$28 sps:$4 sm:$0xff]  }
  0x41   : > { %1313 = vmatpush1.bf16.msra.mxu0 %v3502_v26  ;;  %1666 = vmatpush1.bf16.msra.mxu1 %v3503_v27  ;;  %v3571_v8 = vld [vmem:[%s5053_s1 + $0x160] ss:$28 sps:$4 sm:$0xff]   ;;  %v3568_v12 = vld [vmem:[%s3930_s19 + $0x24] ss:$8 sps:$4 sm:$0xff]   ;;  %v3594_v17 = vld [vmem:[%s5053_s1 + $0xf8] ss:$28 sps:$4 sm:$0xff]  }
  0x42   : > { %1314 = vmatprep.subr.bf16.mxu0 %v3504_v28  ;;  %1667 = vmatprep.subr.bf16.mxu1 %v3506_v29  ;;  %v3581_v13 = vld [vmem:[%s5053_s1 + $0x128] ss:$28 sps:$4 sm:$0xff]   ;;  %v3591_v16 = vld [vmem:[%s5053_s1 + $0xf0] ss:$28 sps:$4 sm:$0xff]   ;;  %v3603_v19 = vld [vmem:[%s5053_s1 + $0xbc] ss:$28 sps:$4 sm:$0xff]  }
  0x43   : > { %v3570_v18 = vld [vmem:[%s3930_s19 + $0x20] ss:$8 sps:$4 sm:$0xff]   ;;  %v3575_v20 = vld [vmem:[%s3930_s19 + $0x34] ss:$8 sps:$4 sm:$0xff]   ;;  %v4199_v27 = vld [vmem:[%s3930_s19 + $0x30] ss:$8 sps:$4 sm:$0xff]  }
  0x44   : > { %v3601_v21 = vld [vmem:[%s5053_s1 + $0xb8] ss:$28 sps:$4 sm:$0xff]   ;;  %v3604_v22 = vld [vmem:[%s5053_s1 + $0xc0] ss:$28 sps:$4 sm:$0xff]   ;;  %v3614_v25 = vld [vmem:[%s5053_s1 + $0x88] ss:$28 sps:$4 sm:$0xff]  }
  0x45   : > { %1315 = vmatpush1.bf16.msra.mxu0 %v3508_v30  ;;  %1668 = vmatpush1.bf16.msra.mxu1 %v3509_v31  ;;  %v3613_v23 = vld [vmem:[%s5053_s1 + $0x84] ss:$28 sps:$4 sm:$0xff]   ;;  %v3623_v26 = vld [vmem:[%s5053_s1 + $0x4c] ss:$28 sps:$4 sm:$0xff]   ;;  %v3633_v31 = vld [vmem:[%s5053_s1 + $0x14] ss:$28 sps:$4 sm:$0xff]  }
  0x46   : > { %1316 = vmatprep.subr.bf16.mxu0 %v3510_v32  ;;  %1669 = vmatprep.subr.bf16.mxu1 %v3512_v33  ;;  %v3611_v24 = vld [vmem:[%s5053_s1 + $0x80] ss:$28 sps:$4 sm:$0xff]   ;;  %v4202_v28 = vld [vmem:[%s3930_s19 + $0x44] ss:$8 sps:$4 sm:$0xff]   ;;  %s5066_s26 = smov (!%p203_p7, %s3221_s26), 127  ;;  %vm2654_vm0 = vcmask 130048  }
  0x47   : > { %v3621_v29 = vld [vmem:[%s5053_s1 + $0x48] ss:$28 sps:$4 sm:$0xff]   ;;  %v3624_v30 = vld [vmem:[%s5053_s1 + $0x50] ss:$28 sps:$4 sm:$0xff]   ;;  %v4280_v48 = vld [vmem:[%s3930_s19 + $0x74] ss:$8 sps:$4 sm:$0xff]  }
  0x48   : > { %v3631_v32 = vld [vmem:[%s5053_s1 + $0x10] ss:$28 sps:$4 sm:$0xff]   ;;  %v4222_v33 = vld [vmem:[%s3930_s19 + $0x40] ss:$8 sps:$4 sm:$0xff]   ;;  %s3403_s27 = smul.u32 56, %s5066_s26 }
  0x49   : > { %1317 = vmatpush2.bf16.msra.mxu0 %v3514_v34  ;;  %1670 = vmatpush2.bf16.msra.mxu1 %v3515_v35  ;;  %v3634_v34 = vld [vmem:[%s5053_s1 + $0x18] ss:$28 sps:$4 sm:$0xff]  }
  0x4a   : > { %1318 = vmatprep.subr.bf16.mxu0 %v3516_v36  ;;  %1671 = vmatprep.subr.bf16.mxu1 %v3518_v37  ;;  %v3643_v35 = vld [vmem:[%s5053_s1 + $0x35c] ss:$28 sps:$4 sm:$0xff]   ;;  %s4423_s12 = scalar_lea.vmem %s5054_s2, %s3403_s27 }
  0x4b   : > { %v4231_v36 = vld [vmem:[%s3930_s19 + $0x54] ss:$8 sps:$4 sm:$0xff]  }
  0x4c   : > { %v3641_v37 = vld [vmem:[%s5053_s1 + $0x358] ss:$28 sps:$4 sm:$0xff]  }
  0x4d   : > { %1319 = vmatpush2.bf16.msra.mxu0 %v3520_v38  ;;  %1672 = vmatpush2.bf16.msra.mxu1 %v3521_v39  ;;  %v3644_v38 = vld [vmem:[%s5053_s1 + $0x360] ss:$28 sps:$4 sm:$0xff]  }
  0x4e   : > { %1320 = vmatprep.subr.bf16.mxu0 %v3522_v40  ;;  %1673 = vmatprep.subr.bf16.mxu1 %v3524_v41  ;;  %v3653_v39 = vld [vmem:[%s5053_s1 + $0x324] ss:$28 sps:$4 sm:$0xff]  }
  0x4f   : > { %v3651_v40 = vld [vmem:[%s5053_s1 + $0x320] ss:$28 sps:$4 sm:$0xff]   ;;  %v3654_v41 = vld [vmem:[%s5053_s1 + $0x328] ss:$28 sps:$4 sm:$0xff]  }
  0x51   : > { %1321 = vmatpush2.bf16.msra.mxu0 %v3526_v42  ;;  %1674 = vmatpush2.bf16.msra.mxu1 %v3527_v43  ;;  %v3663_v42 = vld [vmem:[%s5053_s1 + $0x2ec] ss:$28 sps:$4 sm:$0xff]   ;;  %v4258_v43 = vld [vmem:[%s3930_s19 + $0x50] ss:$8 sps:$4 sm:$0xff]  }
  0x52   : > { %1322 = vmatprep.subr.bf16.mxu0 %v3528_v44  ;;  %1675 = vmatprep.subr.bf16.mxu1 %v3530_v45  ;;  %v4261_v44 = vld [vmem:[%s3930_s19 + $0x64] ss:$8 sps:$4 sm:$0xff]  }
  0x53   : > { %v3661_v45 = vld [vmem:[%s5053_s1 + $0x2e8] ss:$28 sps:$4 sm:$0xff]  }
  0x55   : > { %1323 = vmatpush2.bf16.msra.mxu0 %v3532_v46  ;;  %1676 = vmatpush2.bf16.msra.mxu1 %v3533_v47  ;;  %v3664_v46 = vld [vmem:[%s5053_s1 + $0x2f0] ss:$28 sps:$4 sm:$0xff]   ;;  %v4277_v47 = vld [vmem:[%s3930_s19 + $0x60] ss:$8 sps:$4 sm:$0xff]  }
  0x56   : > { %1324 = vmatprep.subr.bf16.mxu0 %v3534_v49  ;;  %1677 = vmatprep.subr.bf16.mxu1 %v3536_v50  ;;  %v3671_v49 = vld [vmem:[%s5053_s1 + $0x2b0] ss:$28 sps:$4 sm:$0xff]  }
  0x57   : > { %v3673_v50 = vld [vmem:[%s5053_s1 + $0x2b4] ss:$28 sps:$4 sm:$0xff]  }
  0x59   : > { %1325 = vmatpush2.bf16.msra.mxu0 %v3538_v51  ;;  %1678 = vmatpush2.bf16.msra.mxu1 %v3539_v52  ;;  %v3674_v51 = vld [vmem:[%s5053_s1 + $0x2b8] ss:$28 sps:$4 sm:$0xff]  }
  0x5a   : > { %1326 = vmatprep.subr.bf16.mxu0 %v3540_v53  ;;  %1679 = vmatprep.subr.bf16.mxu1 %v3542_v54  ;;  %v4297_v52 = vld [vmem:[%s3930_s19 + $0x70] ss:$8 sps:$4 sm:$0xff]   ;;  %v4300_v53 = vld [vmem:[%s3930_s19 + $0x84] ss:$8 sps:$4 sm:$0xff]   ;;  %v4307_v54 = vld [vmem:[%s3930_s19 + $0x80] ss:$8 sps:$4 sm:$0xff]  }
  0x5d   : > { %1327 = vmatpush2.bf16.msra.mxu0 %v3544_v55  ;;  %1680 = vmatpush2.bf16.msra.mxu1 %v3545_v56  ;;  %v4310_v55 = vld [vmem:[%s3930_s19 + $0x94] ss:$8 sps:$4 sm:$0xff]  }
  0x5e   : > { %1328 = vmatprep.subr.bf16.mxu0 %v3546_v57  ;;  %1681 = vmatprep.subr.bf16.mxu1 %v3548_v58  ;;  %v3681_v56 = vld [vmem:[%s5053_s1 + $0x278] ss:$28 sps:$4 sm:$0xff]   ;;  %v3684_v58 = vld [vmem:[%s5053_s1 + $0x280] ss:$28 sps:$4 sm:$0xff]  }
  0x5f   : > { %v3683_v57 = vld [vmem:[%s5053_s1 + $0x27c] ss:$28 sps:$4 sm:$0xff]  }
  0x61   : > { %1329 = vmatpush2.bf16.msra.mxu0 %v3550_v59  ;;  %1682 = vmatpush2.bf16.msra.mxu1 %v3551_v60  ;;  %v4326_v59 = vld [vmem:[%s3930_s19 + $0x90] ss:$8 sps:$4 sm:$0xff]   ;;  %v4329_v60 = vld [vmem:[%s3930_s19 + $0xa4] ss:$8 sps:$4 sm:$0xff]  }
  0x62   : > { %1330 = vmatprep.subr.bf16.mxu0 %v3552_v61  ;;  %1683 = vmatprep.subr.bf16.mxu1 %v3554_v62  ;;  %v4337_v61 = vld [vmem:[%s3930_s19 + $0xa0] ss:$8 sps:$4 sm:$0xff]   ;;  %v4340_v62 = vld [vmem:[%s3930_s19 + $0xb4] ss:$8 sps:$4 sm:$0xff]  }
  0x65   : > { %1331 = vmatpush2.bf16.msra.mxu0 %v3556_v63  ;;  %1684 = vmatpush2.bf16.msra.mxu1 %v3557_v0  ;;  %v3691_v63 = vld [vmem:[%s5053_s1 + $0x240] ss:$28 sps:$4 sm:$0xff]  }
  0x66   : > { %2006 = vmatprep.subr.bf16.mxu0 %v3563_v1  ;;  %2359 = vmatprep.subr.bf16.mxu1 %v3845_v5  ;;  %v3693_v0 = vld [vmem:[%s5053_s1 + $0x244] ss:$28 sps:$4 sm:$0xff]  }
  0x67   : > { %v3694_v1 = vld [vmem:[%s5053_s1 + $0x248] ss:$28 sps:$4 sm:$0xff]  }
  0x68   : > { %1333 = vmatmul.mubr.bf16.vlgmr.msra.gmra.mxu0 %v3560_v2  ;;  %1686 = vmatmul.mubr.bf16.vlgmr.msra.gmra.mxu1 %v3560_v2  ;;  %v4356_v2 = vld [vmem:[%s3930_s19 + $0xb0] ss:$8 sps:$4 sm:$0xff]  }
  0x69   : > { %2007 = vmatpush1.bf16.msra.mxu0 %v3561_v3  ;;  %2360 = vmatpush1.bf16.msra.mxu1 %v3564_v4  ;;  %v4359_v3 = vld [vmem:[%s3930_s19 + $0xc4] ss:$8 sps:$4 sm:$0xff]   ;;  %v4367_v4 = vld [vmem:[%s3930_s19 + $0xc0] ss:$8 sps:$4 sm:$0xff]  }
  0x6a   : > { %1342 = vmatprep.mubr.bf16.mxu0 %v3565_v6  ;;  %1695 = vmatprep.mubr.bf16.mxu1 %v3565_v6  ;;  %v4370_v6 = vld [vmem:[%s3930_s19 + $0xd4] ss:$8 sps:$4 sm:$0xff]  }
  0x6b   : > { %2008 = vmatprep.subr.bf16.mxu0 %v3573_v7  ;;  %2361 = vmatprep.subr.bf16.mxu1 %v3845_v5  ;;  %v3701_v7 = vld [vmem:[%s5053_s1 + $0x208] ss:$28 sps:$4 sm:$0xff]  }
  0x6d   : > { %2009 = vmatpush1.bf16.msra.mxu0 %v3571_v8  ;;  %2362 = vmatpush1.bf16.msra.mxu1 %v3574_v9  ;;  %v3703_v8 = vld [vmem:[%s5053_s1 + $0x20c] ss:$28 sps:$4 sm:$0xff]  }
  0x6e   : > { %2010 = vmatprep.subr.bf16.mxu0 %v3583_v10  ;;  %2363 = vmatprep.subr.bf16.mxu1 %v3845_v5  ;;  %v3704_v9 = vld [vmem:[%s5053_s1 + $0x210] ss:$28 sps:$4 sm:$0xff]  }
  0x6f   : > { %v3627_v10 = vld [vmem:[%s3930_s19 + $0xd0] ss:$8 sps:$4 sm:$0xff]  }
  0x70   : > { %1343 = vmatmul.mubr.bf16.gmra.mxu0 %v3567_v11  ;;  %1696 = vmatmul.mubr.bf16.gmra.mxu1 %v3567_v11  ;;  %v3628_v11 = vld [vmem:[%s3930_s19 + $0xe4] ss:$8 sps:$4 sm:$0xff]  }
  0x71   : > { %1352 = vmatprep.mubr.bf16.mxu0 %v3568_v12  ;;  %1705 = vmatprep.mubr.bf16.mxu1 %v3568_v12  ;;  %v3630_v12 = vld [vmem:[%s3930_s19 + $0xe0] ss:$8 sps:$4 sm:$0xff]  }
  0x72   : > { %2011 = vmatpush1.bf16.msra.mxu0 %v3581_v13  ;;  %2364 = vmatpush1.bf16.msra.mxu1 %v3584_v14  ;;  %v3635_v13 = vld [vmem:[%s3930_s19 + $0xf4] ss:$8 sps:$4 sm:$0xff]   ;;  %v3711_v14 = vld [vmem:[%s5053_s1 + $0x1d0] ss:$28 sps:$4 sm:$0xff]  }
  0x73   : > { %2012 = vmatprep.subr.bf16.mxu0 %v3593_v15  ;;  %2365 = vmatprep.subr.bf16.mxu1 %v3845_v5  ;;  %v3714_v15 = vld [vmem:[%s5053_s1 + $0x1d8] ss:$28 sps:$4 sm:$0xff]  }
  0x76   : > { %2013 = vmatpush1.bf16.msra.mxu0 %v3591_v16  ;;  %2366 = vmatpush1.bf16.msra.mxu1 %v3594_v17  ;;  %v3637_v16 = vld [vmem:[%s3930_s19 + $0xf0] ss:$8 sps:$4 sm:$0xff]   ;;  %v3638_v17 = vld [vmem:[%s3930_s19 + $0x104] ss:$8 sps:$4 sm:$0xff]  }
  0x77   : > { %2014 = vmatprep.subr.bf16.mxu0 %v3603_v19  ;;  %2367 = vmatprep.subr.bf16.mxu1 %v3845_v5  ;;  %v3645_v19 = vld [vmem:[%s3930_s19 + $0x114] ss:$8 sps:$4 sm:$0xff]  }
  0x78   : > { %1353 = vmatmul.mubr.bf16.gmra.mxu0 %v3570_v18  ;;  %1706 = vmatmul.mubr.bf16.gmra.mxu1 %v3570_v18  ;;  %v3640_v18 = vld [vmem:[%s3930_s19 + $0x100] ss:$8 sps:$4 sm:$0xff]  }
  0x79   : > { %1362 = vmatprep.mubr.bf16.mxu0 %v3575_v20  ;;  %1715 = vmatprep.mubr.bf16.mxu1 %v3575_v20  ;;  %v3647_v20 = vld [vmem:[%s3930_s19 + $0x110] ss:$8 sps:$4 sm:$0xff]  }
  0x7a   : > { %2015 = vmatpush1.bf16.msra.mxu0 %v3601_v21  ;;  %2368 = vmatpush1.bf16.msra.mxu1 %v3604_v22  ;;  %v3648_v21 = vld [vmem:[%s3930_s19 + $0x124] ss:$8 sps:$4 sm:$0xff]   ;;  %v3650_v22 = vld [vmem:[%s3930_s19 + $0x120] ss:$8 sps:$4 sm:$0xff]  }
  0x7b   : > { %2016 = vmatprep.subr.bf16.mxu0 %v3613_v23  ;;  %2369 = vmatprep.subr.bf16.mxu1 %v3845_v5  ;;  %v3655_v23 = vld [vmem:[%s3930_s19 + $0x134] ss:$8 sps:$4 sm:$0xff]  }
  0x7e   : > { %2017 = vmatpush1.bf16.msra.mxu0 %v3611_v24  ;;  %2370 = vmatpush1.bf16.msra.mxu1 %v3614_v25  ;;  %v3657_v24 = vld [vmem:[%s3930_s19 + $0x130] ss:$8 sps:$4 sm:$0xff]   ;;  %v3658_v25 = vld [vmem:[%s3930_s19 + $0x144] ss:$8 sps:$4 sm:$0xff]  }
  0x7f   : > { %2018 = vmatprep.subr.bf16.mxu0 %v3623_v26  ;;  %2371 = vmatprep.subr.bf16.mxu1 %v3845_v5  ;;  %v3660_v26 = vld [vmem:[%s3930_s19 + $0x140] ss:$8 sps:$4 sm:$0xff]  }
  0x80   : > { %1363 = vmatmul.mubr.bf16.gmra.mxu0 %v4199_v27  ;;  %1716 = vmatmul.mubr.bf16.gmra.mxu1 %v4199_v27 }
  0x81   : > { %1372 = vmatprep.mubr.bf16.mxu0 %v4202_v28  ;;  %1725 = vmatprep.mubr.bf16.mxu1 %v4202_v28 }
  0x82   : > { %2019 = vmatpush1.bf16.msra.mxu0 %v3621_v29  ;;  %2372 = vmatpush1.bf16.msra.mxu1 %v3624_v30  ;;  %v3665_v29 = vld [vmem:[%s3930_s19 + $0x154] ss:$8 sps:$4 sm:$0xff]   ;;  %v3667_v30 = vld [vmem:[%s3930_s19 + $0x150] ss:$8 sps:$4 sm:$0xff]  }
  0x83   : > { %2020 = vmatprep.subr.bf16.mxu0 %v3633_v31  ;;  %2373 = vmatprep.subr.bf16.mxu1 %v3845_v5  ;;  %v3668_v31 = vld [vmem:[%s3930_s19 + $0x164] ss:$8 sps:$4 sm:$0xff]  }
  0x86   : > { %2021 = vmatpush1.bf16.msra.mxu0 %v3631_v32  ;;  %2374 = vmatpush1.bf16.msra.mxu1 %v3634_v34  ;;  %v3670_v32 = vld [vmem:[%s3930_s19 + $0x160] ss:$8 sps:$4 sm:$0xff]   ;;  %v3675_v34 = vld [vmem:[%s3930_s19 + $0x174] ss:$8 sps:$4 sm:$0xff]  }
  0x87   : > { %2022 = vmatprep.subr.bf16.mxu0 %v3643_v35  ;;  %2375 = vmatprep.subr.bf16.mxu1 %v3845_v5  ;;  %v3677_v35 = vld [vmem:[%s3930_s19 + $0x170] ss:$8 sps:$4 sm:$0xff]  }
  0x88   : > { %1373 = vmatmul.mubr.bf16.gmra.mxu0 %v4222_v33  ;;  %1726 = vmatmul.mubr.bf16.gmra.mxu1 %v4222_v33 }
  0x89   : > { %1382 = vmatprep.mubr.bf16.mxu0 %v4231_v36  ;;  %1735 = vmatprep.mubr.bf16.mxu1 %v4231_v36 }
  0x8a   : > { %2023 = vmatpush2.bf16.msra.mxu0 %v3641_v37  ;;  %2376 = vmatpush2.bf16.msra.mxu1 %v3644_v38  ;;  %v3678_v37 = vld [vmem:[%s3930_s19 + $0x184] ss:$8 sps:$4 sm:$0xff]   ;;  %v3680_v38 = vld [vmem:[%s3930_s19 + $0x180] ss:$8 sps:$4 sm:$0xff]  }
  0x8b   : > { %2024 = vmatprep.subr.bf16.mxu0 %v3653_v39  ;;  %2377 = vmatprep.subr.bf16.mxu1 %v3845_v5  ;;  %v3685_v39 = vld [vmem:[%s3930_s19 + $0x194] ss:$8 sps:$4 sm:$0xff]  }
  0x8e   : > { %2025 = vmatpush2.bf16.msra.mxu0 %v3651_v40  ;;  %2378 = vmatpush2.bf16.msra.mxu1 %v3654_v41 }
  0x8f   : > { %2026 = vmatprep.subr.bf16.mxu0 %v3663_v42  ;;  %2379 = vmatprep.subr.bf16.mxu1 %v3845_v5 }
  0x90   : > { %1383 = vmatmul.mubr.bf16.gmra.mxu0 %v4258_v43  ;;  %1736 = vmatmul.mubr.bf16.gmra.mxu1 %v4258_v43 }
  0x91   : > { %1392 = vmatprep.mubr.bf16.mxu0 %v4261_v44  ;;  %1745 = vmatprep.mubr.bf16.mxu1 %v4261_v44 }
  0x92   : > { %2027 = vmatpush2.bf16.msra.mxu0 %v3661_v45  ;;  %2380 = vmatpush2.bf16.msra.mxu1 %v3664_v46 }
  0x93   : > { %2381 = vmatprep.subr.bf16.mxu1 %v3845_v5  ;;  %2028 = vmatprep.subr.bf16.mxu0 %v3673_v50  ;;  %v3687_v50 = vld [vmem:[%s3930_s19 + $0x190] ss:$8 sps:$4 sm:$0xff]  }
  0x96   : > { %2382 = vmatpush2.bf16.msra.mxu1 %v3674_v51  ;;  %2029 = vmatpush2.bf16.msra.mxu0 %v3671_v49  ;;  %v3688_v51 = vld [vmem:[%s3930_s19 + $0x1a4] ss:$8 sps:$4 sm:$0xff]  }
  0x97   : > { %2383 = vmatprep.subr.bf16.mxu1 %v3845_v5  ;;  %2030 = vmatprep.subr.bf16.mxu0 %v3683_v57 }
  0x98   : > { %1393 = vmatmul.mubr.bf16.gmra.mxu0 %v4277_v47  ;;  %1746 = vmatmul.mubr.bf16.gmra.mxu1 %v4277_v47 }
  0x99   : > { %1402 = vmatprep.mubr.bf16.mxu0 %v4280_v48  ;;  %1755 = vmatprep.mubr.bf16.mxu1 %v4280_v48 }
  0x9a   : > { %2031 = vmatpush2.bf16.msra.mxu0 %v3681_v56  ;;  %2384 = vmatpush2.bf16.msra.mxu1 %v3684_v58 }
  0x9b   : > { %2385 = vmatprep.subr.bf16.mxu1 %v3845_v5  ;;  %2032 = vmatprep.subr.bf16.mxu0 %v3693_v0 }
  0x9e   : > { %2033 = vmatpush2.bf16.msra.mxu0 %v3691_v63  ;;  %2386 = vmatpush2.bf16.msra.mxu1 %v3694_v1 }
  0x9f   : > { %2387 = vmatprep.subr.bf16.mxu1 %v3845_v5  ;;  %2034 = vmatprep.subr.bf16.mxu0 %v3703_v8 }
  0xa0   : > { %1403 = vmatmul.mubr.bf16.gmra.mxu0 %v4297_v52  ;;  %1756 = vmatmul.mubr.bf16.gmra.mxu1 %v4297_v52 }
  0xa1   : > { %1412 = vmatprep.mubr.bf16.mxu0 %v4300_v53  ;;  %1765 = vmatprep.mubr.bf16.mxu1 %v4300_v53 }
  0xa2   : > { %2035 = vmatpush2.bf16.msra.mxu0 %v3701_v7  ;;  %2388 = vmatpush2.bf16.msra.mxu1 %v3704_v9  ;;  %v3690_v9 = vld [vmem:[%s3930_s19 + $0x1a0] ss:$8 sps:$4 sm:$0xff]  }
  0xa3   : > { %2389 = vmatprep.subr.bf16.mxu1 %v3845_v5  ;;  %v3713_v5 = vld [vmem:[%s5053_s1 + $0x1d4] ss:$28 sps:$4 sm:$0xff]  }
  0xa4   : > { %2036 = vmatprep.subr.bf16.mxu0 %v3713_v5 }
  0xa6   : > { %2037 = vmatpush2.bf16.msra.mxu0 %v3711_v14  ;;  %2390 = vmatpush2.bf16.msra.mxu1 %v3714_v15 }
  0xa8   : > { %1413 = vmatmul.mubr.bf16.gmra.mxu0 %v4307_v54  ;;  %1766 = vmatmul.mubr.bf16.gmra.mxu1 %v4307_v54 }
  0xa9   : > { %1422 = vmatprep.mubr.bf16.mxu0 %v4310_v55  ;;  %1775 = vmatprep.mubr.bf16.mxu1 %v4310_v55 }
  0xb0   : > { %1423 = vmatmul.mubr.bf16.gmra.mxu0 %v4326_v59  ;;  %1776 = vmatmul.mubr.bf16.gmra.mxu1 %v4326_v59 }
  0xb1   : > { %1432 = vmatprep.mubr.bf16.mxu0 %v4329_v60  ;;  %1785 = vmatprep.mubr.bf16.mxu1 %v4329_v60 }
  0xb8   : > { %1433 = vmatmul.mubr.bf16.gmra.mxu0 %v4337_v61  ;;  %1786 = vmatmul.mubr.bf16.gmra.mxu1 %v4337_v61 }
  0xb9   : > { %1442 = vmatprep.mubr.bf16.mxu0 %v4340_v62  ;;  %1795 = vmatprep.mubr.bf16.mxu1 %v4340_v62 }
  0xc0   : > { %1443 = vmatmul.mubr.bf16.gmra.mxu0 %v4356_v2  ;;  %1796 = vmatmul.mubr.bf16.gmra.mxu1 %v4356_v2 }
  0xc1   : > { %1452 = vmatprep.mubr.bf16.mxu0 %v4359_v3  ;;  %1805 = vmatprep.mubr.bf16.mxu1 %v4359_v3 }
  0xc8   : > { %1453 = vmatmul.mubr.bf16.gmra.mxu0 %v4367_v4  ;;  %1806 = vmatmul.mubr.bf16.gmra.mxu1 %v4367_v4 }
  0xc9   : > { %1462 = vmatprep.mubr.bf16.mxu0 %v4370_v6  ;;  %1815 = vmatprep.mubr.bf16.mxu1 %v4370_v6 }
  0xd0   : > { %1463 = vmatmul.mubr.bf16.gmra.mxu0 %v3627_v10  ;;  %1816 = vmatmul.mubr.bf16.gmra.mxu1 %v3627_v10  ;;  %v3695_v10 = vld [vmem:[%s3930_s19 + $0x1b4] ss:$8 sps:$4 sm:$0xff]  }
  0xd1   : > { %1472 = vmatprep.mubr.bf16.mxu0 %v3628_v11  ;;  %1825 = vmatprep.mubr.bf16.mxu1 %v3628_v11 }
  0xd8   : > { %1473 = vmatmul.mubr.bf16.gmra.mxu0 %v3630_v12  ;;  %1826 = vmatmul.mubr.bf16.gmra.mxu1 %v3630_v12 }
  0xd9   : > { %1482 = vmatprep.mubr.bf16.mxu0 %v3635_v13  ;;  %1835 = vmatprep.mubr.bf16.mxu1 %v3635_v13 }
  0xe0   : > { %1483 = vmatmul.mubr.bf16.gmra.mxu0 %v3637_v16  ;;  %1836 = vmatmul.mubr.bf16.gmra.mxu1 %v3637_v16 }
  0xe1   : > { %1492 = vmatprep.mubr.bf16.mxu0 %v3638_v17  ;;  %1845 = vmatprep.mubr.bf16.mxu1 %v3638_v17 }
  0xe8   : > { %1493 = vmatmul.mubr.bf16.gmra.mxu0 %v3640_v18  ;;  %1846 = vmatmul.mubr.bf16.gmra.mxu1 %v3640_v18  ;;  %v3697_v18 = vld [vmem:[%s3930_s19 + $0x1b0] ss:$8 sps:$4 sm:$0xff]  }
  0xe9   : > { %1502 = vmatprep.mubr.bf16.mxu0 %v3645_v19  ;;  %1855 = vmatprep.mubr.bf16.mxu1 %v3645_v19  ;;  %v3698_v19 = vld [vmem:[%s3930_s19 + $0x1c4] ss:$8 sps:$4 sm:$0xff]  }
  0xf0   : > { %1503 = vmatmul.mubr.bf16.gmra.mxu0 %v3647_v20  ;;  %1856 = vmatmul.mubr.bf16.gmra.mxu1 %v3647_v20 }
  0xf1   : > { %1512 = vmatprep.mubr.bf16.mxu0 %v3648_v21  ;;  %1865 = vmatprep.mubr.bf16.mxu1 %v3648_v21 }
  0xf8   : > { %1513 = vmatmul.mubr.bf16.gmra.mxu0 %v3650_v22  ;;  %1866 = vmatmul.mubr.bf16.gmra.mxu1 %v3650_v22 }
  0xf9   : > { %1522 = vmatprep.mubr.bf16.mxu0 %v3655_v23  ;;  %1875 = vmatprep.mubr.bf16.mxu1 %v3655_v23 }
 0x100   : > { %1523 = vmatmul.mubr.bf16.gmra.mxu0 %v3657_v24  ;;  %1876 = vmatmul.mubr.bf16.gmra.mxu1 %v3657_v24 }
 0x101   : > { %1532 = vmatprep.mubr.bf16.mxu0 %v3658_v25  ;;  %1885 = vmatprep.mubr.bf16.mxu1 %v3658_v25 }
 0x108   : > { %1533 = vmatmul.mubr.bf16.gmra.mxu0 %v3660_v26  ;;  %1886 = vmatmul.mubr.bf16.gmra.mxu1 %v3660_v26 }
 0x109   : > { %1542 = vmatprep.mubr.bf16.mxu0 %v3665_v29  ;;  %1895 = vmatprep.mubr.bf16.mxu1 %v3665_v29 }
 0x110   : > { %1543 = vmatmul.mubr.bf16.gmra.mxu0 %v3667_v30  ;;  %1896 = vmatmul.mubr.bf16.gmra.mxu1 %v3667_v30  ;;  %v3700_v30 = vld [vmem:[%s3930_s19 + $0x1c0] ss:$8 sps:$4 sm:$0xff]  }
 0x111   : > { %1552 = vmatprep.mubr.bf16.mxu0 %v3668_v31  ;;  %1905 = vmatprep.mubr.bf16.mxu1 %v3668_v31  ;;  %v3705_v31 = vld [vmem:[%s3930_s19 + $0x1d4] ss:$8 sps:$4 sm:$0xff]  }
 0x118   : > { %1553 = vmatmul.mubr.bf16.gmra.mxu0 %v3670_v32  ;;  %1906 = vmatmul.mubr.bf16.gmra.mxu1 %v3670_v32 }
 0x119   : > { %1562 = vmatprep.mubr.bf16.mxu0 %v3675_v34  ;;  %1915 = vmatprep.mubr.bf16.mxu1 %v3675_v34 }
 0x120   : > { %1563 = vmatmul.mubr.bf16.gmra.mxu0 %v3677_v35  ;;  %1916 = vmatmul.mubr.bf16.gmra.mxu1 %v3677_v35 }
 0x121   : > { %1572 = vmatprep.mubr.bf16.mxu0 %v3678_v37  ;;  %1925 = vmatprep.mubr.bf16.mxu1 %v3678_v37 }
 0x128   : > { %v1334_v40 = vpop.f32.mrf.mxu0  ;;  %1573 = vmatmul.mubr.bf16.gmra.mxu0 %v3680_v38  ;;  %v1687_v41 = vpop.f32.mrf.mxu1  ;;  %1926 = vmatmul.mubr.bf16.gmra.mxu1 %v3680_v38 }
 0x129   : > { %2648 = vst [vmem:[%s4423_s12] sm:$0xff] %v1334_v40  ;;  %2650 = vst [vmem:[%s4423_s12 + $0x10] sm:$0xff] %v1687_v41  ;;  %1582 = vmatprep.mubr.bf16.mxu0 %v3685_v39  ;;  %1935 = vmatprep.mubr.bf16.mxu1 %v3685_v39 }
 0x12a   : > { %v1336_v42 = vpop.f32.mrf.mxu0  ;;  %v1689_v45 = vpop.f32.mrf.mxu1 }
 0x12b   : > { %2649 = vst [vmem:[%s4423_s12 + $0x8] sm:$0xff] %v1336_v42  ;;  %2651 = vst [vmem:[%s4423_s12 + $0x18] sm:$0xff] %v1689_v45  ;;  %v3707_v42 = vld [vmem:[%s3930_s19 + $0x1d0] ss:$8 sps:$4 sm:$0xff]   ;;  %v3708_v45 = vld [vmem:[%s3930_s19 + $0x1e4] ss:$8 sps:$4 sm:$0xff]  }
 0x12c   : > { %v1338_v46 = vpop.f32.mrf.mxu0  ;;  %v1691_v49 = vpop.f32.mrf.mxu1 }
 0x12d   : > { %2656 = vst [vmem:[%s4423_s12 + $0x38] sm:$0xff] %v1338_v46  ;;  %2658 = vst [vmem:[%s4423_s12 + $0x48] sm:$0xff] %v1691_v49 }
 0x12e   : > { %v1340_v56 = vpop.f32.mrf.mxu0  ;;  %v1693_v57 = vpop.f32.mrf.mxu1 }
 0x12f   : > { %2657 = vst [vmem:[%s4423_s12 + $0x40] sm:$0xff] %v1340_v56  ;;  %2659 = vst [vmem:[%s4423_s12 + $0x50] sm:$0xff] %v1693_v57 }
 0x130   : > { %v1344_v58 = vpop.f32.mrf.mxu0  ;;  %1583 = vmatmul.mubr.bf16.gmra.mxu0 %v3687_v50  ;;  %v1697_v63 = vpop.f32.mrf.mxu1  ;;  %1936 = vmatmul.mubr.bf16.gmra.mxu1 %v3687_v50 }
 0x131   : > { %2663 = vst [vmem:[%s4423_s12 + $0x70] sm:$0xff] %v1344_v58  ;;  %2665 = vst [vmem:[%s4423_s12 + $0x80] sm:$0xff] %v1697_v63  ;;  %1592 = vmatprep.mubr.bf16.mxu0 %v3688_v51  ;;  %1945 = vmatprep.mubr.bf16.mxu1 %v3688_v51 }
 0x132   : > { %v1346_v0 = vpop.f32.mrf.mxu0  ;;  %v1699_v1 = vpop.f32.mrf.mxu1 }
 0x133   : > { %2664 = vst [vmem:[%s4423_s12 + $0x78] sm:$0xff] %v1346_v0  ;;  %2666 = vst [vmem:[%s4423_s12 + $0x88] sm:$0xff] %v1699_v1  ;;  %v3710_v0 = vld [vmem:[%s3930_s19 + $0x1e0] ss:$8 sps:$4 sm:$0xff]   ;;  %v3715_v1 = vld [vmem:[%s3930_s19 + $0x1f4] ss:$8 sps:$4 sm:$0xff]  }
 0x134   : > { %v1348_v7 = vpop.f32.mrf.mxu0  ;;  %v1701_v8 = vpop.f32.mrf.mxu1 }
 0x135   : > { %2670 = vst [vmem:[%s4423_s12 + $0xa8] sm:$0xff] %v1348_v7  ;;  %2672 = vst [vmem:[%s4423_s12 + $0xb8] sm:$0xff] %v1701_v8 }
 0x136   : > { %v1350_v11 = vpop.f32.mrf.mxu0  ;;  %v1703_v12 = vpop.f32.mrf.mxu1 }
 0x137   : > { %2671 = vst [vmem:[%s4423_s12 + $0xb0] sm:$0xff] %v1350_v11  ;;  %2673 = vst [vmem:[%s4423_s12 + $0xc0] sm:$0xff] %v1703_v12 }
 0x138   : > { %v1354_v13 = vpop.f32.mrf.mxu0  ;;  %1593 = vmatmul.mubr.bf16.gmra.mxu0 %v3690_v9  ;;  %v1707_v14 = vpop.f32.mrf.mxu1  ;;  %1946 = vmatmul.mubr.bf16.gmra.mxu1 %v3690_v9 }
 0x139   : > { %2677 = vst [vmem:[%s4423_s12 + $0xe0] sm:$0xff] %v1354_v13  ;;  %2679 = vst [vmem:[%s4423_s12 + $0xf0] sm:$0xff] %v1707_v14  ;;  %1602 = vmatprep.mubr.bf16.mxu0 %v3695_v10  ;;  %1955 = vmatprep.mubr.bf16.mxu1 %v3695_v10 }
 0x13a   : > { %v1356_v5 = vpop.f32.mrf.mxu0  ;;  %v1709_v15 = vpop.f32.mrf.mxu1 }
 0x13b   : > { %2678 = vst [vmem:[%s4423_s12 + $0xe8] sm:$0xff] %v1356_v5  ;;  %2680 = vst [vmem:[%s4423_s12 + $0xf8] sm:$0xff] %v1709_v15  ;;  %v3717_v5 = vld [vmem:[%s3930_s19 + $0x1f0] ss:$8 sps:$4 sm:$0xff]  }
 0x13c   : > { %v1358_v16 = vpop.f32.mrf.mxu0  ;;  %v1711_v17 = vpop.f32.mrf.mxu1 }
 0x13d   : > { %2684 = vst [vmem:[%s4423_s12 + $0x118] sm:$0xff] %v1358_v16  ;;  %2686 = vst [vmem:[%s4423_s12 + $0x128] sm:$0xff] %v1711_v17 }
 0x13e   : > { %v1360_v20 = vpop.f32.mrf.mxu0  ;;  %v1713_v21 = vpop.f32.mrf.mxu1 }
 0x13f   : > { %2685 = vst [vmem:[%s4423_s12 + $0x120] sm:$0xff] %v1360_v20  ;;  %2687 = vst [vmem:[%s4423_s12 + $0x130] sm:$0xff] %v1713_v21 }
 0x140   : > { %v1364_v22 = vpop.f32.mrf.mxu0  ;;  %1603 = vmatmul.mubr.bf16.gmra.mxu0 %v3697_v18  ;;  %v1717_v23 = vpop.f32.mrf.mxu1  ;;  %1956 = vmatmul.mubr.bf16.gmra.mxu1 %v3697_v18 }
 0x141   : > { %2691 = vst [vmem:[%s4423_s12 + $0x150] sm:$0xff] %v1364_v22  ;;  %2693 = vst [vmem:[%s4423_s12 + $0x160] sm:$0xff] %v1717_v23  ;;  %1612 = vmatprep.mubr.bf16.mxu0 %v3698_v19  ;;  %1965 = vmatprep.mubr.bf16.mxu1 %v3698_v19  ;;  %v3718_v19 = vld [vmem:[%s3930_s19 + $0x4] ss:$8 sps:$4 sm:$0xff]  }
 0x142   : > { %v1366_v24 = vpop.f32.mrf.mxu0  ;;  %v1719_v25 = vpop.f32.mrf.mxu1 }
 0x143   : > { %2692 = vst [vmem:[%s4423_s12 + $0x158] sm:$0xff] %v1366_v24  ;;  %2694 = vst [vmem:[%s4423_s12 + $0x168] sm:$0xff] %v1719_v25 }
 0x144   : > { %v1368_v26 = vpop.f32.mrf.mxu0  ;;  %v1721_v29 = vpop.f32.mrf.mxu1 }
 0x145   : > { %2698 = vst [vmem:[%s4423_s12 + $0x188] sm:$0xff] %v1368_v26  ;;  %2700 = vst [vmem:[%s4423_s12 + $0x198] sm:$0xff] %v1721_v29 }
 0x146   : > { %v1370_v32 = vpop.f32.mrf.mxu0  ;;  %v1723_v34 = vpop.f32.mrf.mxu1 }
 0x147   : > { %2699 = vst [vmem:[%s4423_s12 + $0x190] sm:$0xff] %v1370_v32  ;;  %2701 = vst [vmem:[%s4423_s12 + $0x1a0] sm:$0xff] %v1723_v34 }
 0x148   : > { %v1374_v35 = vpop.f32.mrf.mxu0  ;;  %1613 = vmatmul.mubr.bf16.gmra.mxu0 %v3700_v30  ;;  %v1727_v37 = vpop.f32.mrf.mxu1  ;;  %1966 = vmatmul.mubr.bf16.gmra.mxu1 %v3700_v30  ;;  %v3719_v30 = vld [vmem:[%s3930_s19] ss:$8 sps:$4 sm:$0xff]  }
 0x149   : > { %2705 = vst [vmem:[%s4423_s12 + $0x1c0] sm:$0xff] %v1374_v35  ;;  %2707 = vst [vmem:[%s4423_s12 + $0x1d0] sm:$0xff] %v1727_v37  ;;  %1622 = vmatprep.mubr.bf16.mxu0 %v3705_v31  ;;  %1975 = vmatprep.mubr.bf16.mxu1 %v3705_v31  ;;  %v3720_v31 = vld [vmem:[%s3930_s19 + $0x14] ss:$8 sps:$4 sm:$0xff]  }
 0x14a   : > { %v1376_v38 = vpop.f32.mrf.mxu0  ;;  %v1729_v39 = vpop.f32.mrf.mxu1 }
 0x14b   : > { %2706 = vst [vmem:[%s4423_s12 + $0x1c8] sm:$0xff] %v1376_v38  ;;  %2708 = vst [vmem:[%s4423_s12 + $0x1d8] sm:$0xff] %v1729_v39 }
 0x14c   : > { %v1378_v40 = vpop.f32.mrf.mxu0  ;;  %v1731_v41 = vpop.f32.mrf.mxu1 }
 0x14d   : > { %2712 = vst [vmem:[%s4423_s12 + $0x1f8] sm:$0xff] %v1378_v40  ;;  %2714 = vst [vmem:[%s4423_s12 + $0x208] sm:$0xff] %v1731_v41 }
 0x14e   : > { %v1380_v46 = vpop.f32.mrf.mxu0  ;;  %v1733_v49 = vpop.f32.mrf.mxu1 }
 0x14f   : > { %2713 = vst [vmem:[%s4423_s12 + $0x200] sm:$0xff] %v1380_v46  ;;  %2715 = vst [vmem:[%s4423_s12 + $0x210] sm:$0xff] %v1733_v49 }
 0x150   : > { %v1384_v50 = vpop.f32.mrf.mxu0  ;;  %1623 = vmatmul.mubr.bf16.gmra.mxu0 %v3707_v42  ;;  %v1737_v51 = vpop.f32.mrf.mxu1  ;;  %1976 = vmatmul.mubr.bf16.gmra.mxu1 %v3707_v42  ;;  %v3721_v42 = vld [vmem:[%s3930_s19 + $0x10] ss:$8 sps:$4 sm:$0xff]  }
 0x151   : > { %2719 = vst [vmem:[%s4423_s12 + $0x230] sm:$0xff] %v1384_v50  ;;  %2721 = vst [vmem:[%s4423_s12 + $0x240] sm:$0xff] %v1737_v51  ;;  %1632 = vmatprep.mubr.bf16.mxu0 %v3708_v45  ;;  %1985 = vmatprep.mubr.bf16.mxu1 %v3708_v45  ;;  %v3722_v45 = vld [vmem:[%s3930_s19 + $0x24] ss:$8 sps:$4 sm:$0xff]  }
 0x152   : > { %v1386_v56 = vpop.f32.mrf.mxu0  ;;  %v1739_v57 = vpop.f32.mrf.mxu1 }
 0x153   : > { %2720 = vst [vmem:[%s4423_s12 + $0x238] sm:$0xff] %v1386_v56  ;;  %2722 = vst [vmem:[%s4423_s12 + $0x248] sm:$0xff] %v1739_v57 }
 0x154   : > { %v1388_v58 = vpop.f32.mrf.mxu0  ;;  %v1741_v63 = vpop.f32.mrf.mxu1 }
 0x155   : > { %2726 = vst [vmem:[%s4423_s12 + $0x268] sm:$0xff] %v1388_v58  ;;  %2728 = vst [vmem:[%s4423_s12 + $0x278] sm:$0xff] %v1741_v63 }
 0x156   : > { %v1390_v7 = vpop.f32.mrf.mxu0  ;;  %v1743_v8 = vpop.f32.mrf.mxu1 }
 0x157   : > { %2727 = vst [vmem:[%s4423_s12 + $0x270] sm:$0xff] %v1390_v7  ;;  %2729 = vst [vmem:[%s4423_s12 + $0x280] sm:$0xff] %v1743_v8 }
 0x158   : > { %v1394_v9 = vpop.f32.mrf.mxu0  ;;  %1633 = vmatmul.mubr.bf16.gmra.mxu0 %v3710_v0  ;;  %v1747_v10 = vpop.f32.mrf.mxu1  ;;  %1986 = vmatmul.mubr.bf16.gmra.mxu1 %v3710_v0  ;;  %v3723_v0 = vld [vmem:[%s3930_s19 + $0x20] ss:$8 sps:$4 sm:$0xff]  }
 0x159   : > { %2733 = vst [vmem:[%s4423_s12 + $0x2a0] sm:$0xff] %v1394_v9  ;;  %2735 = vst [vmem:[%s4423_s12 + $0x2b0] sm:$0xff] %v1747_v10  ;;  %1642 = vmatprep.mubr.bf16.mxu0 %v3715_v1  ;;  %1995 = vmatprep.mubr.bf16.mxu1 %v3715_v1  ;;  %v3724_v1 = vld [vmem:[%s3930_s19 + $0x34] ss:$8 sps:$4 sm:$0xff]  }
 0x15a   : > { %v1396_v11 = vpop.f32.mrf.mxu0  ;;  %v1749_v12 = vpop.f32.mrf.mxu1 }
 0x15b   : > { %2734 = vst [vmem:[%s4423_s12 + $0x2a8] sm:$0xff] %v1396_v11  ;;  %2736 = vst [vmem:[%s4423_s12 + $0x2b8] sm:$0xff] %v1749_v12 }
 0x15c   : > { %v1398_v13 = vpop.f32.mrf.mxu0  ;;  %v1751_v14 = vpop.f32.mrf.mxu1 }
 0x15d   : > { %2740 = vst [vmem:[%s4423_s12 + $0x2d8] sm:$0xff] %v1398_v13  ;;  %2742 = vst [vmem:[%s4423_s12 + $0x2e8] sm:$0xff] %v1751_v14 }
 0x15e   : > { %v1400_v15 = vpop.f32.mrf.mxu0  ;;  %v1753_v16 = vpop.f32.mrf.mxu1 }
 0x15f   : > { %2741 = vst [vmem:[%s4423_s12 + $0x2e0] sm:$0xff] %v1400_v15  ;;  %2743 = vst [vmem:[%s4423_s12 + $0x2f0] sm:$0xff] %v1753_v16 }
 0x160   : > { %v1404_v17 = vpop.f32.mrf.mxu0  ;;  %1643 = vmatmul.mubr.bf16.gmra.mxu0 %v3717_v5  ;;  %v1757_v18 = vpop.f32.mrf.mxu1  ;;  %1996 = vmatmul.mubr.bf16.gmra.mxu1 %v3717_v5 }
 0x161   : > { %2747 = vst [vmem:[%s4423_s12 + $0x310] sm:$0xff] %v1404_v17  ;;  %2749 = vst [vmem:[%s4423_s12 + $0x320] sm:$0xff] %v1757_v18  ;;  %2038 = vmatprep.mubr.bf16.mxu0 %v3718_v19  ;;  %2391 = vmatprep.mubr.bf16.mxu1 %v3718_v19 }
 0x162   : > { %v1406_v20 = vpop.f32.mrf.mxu0  ;;  %v1759_v21 = vpop.f32.mrf.mxu1 }
 0x163   : > { %2748 = vst [vmem:[%s4423_s12 + $0x318] sm:$0xff] %v1406_v20  ;;  %2750 = vst [vmem:[%s4423_s12 + $0x328] sm:$0xff] %v1759_v21 }
 0x164   : > { %v1408_v22 = vpop.f32.mrf.mxu0  ;;  %v1761_v23 = vpop.f32.mrf.mxu1 }
 0x165   : > { %2754 = vst [vmem:[%s4423_s12 + $0x348] sm:$0xff] %v1408_v22  ;;  %2756 = vst [vmem:[%s4423_s12 + $0x358] sm:$0xff] %v1761_v23 }
 0x166   : > { %v1410_v24 = vpop.f32.mrf.mxu0  ;;  %v1763_v25 = vpop.f32.mrf.mxu1 }
 0x167   : > { %2755 = vst [vmem:[%s4423_s12 + $0x350] sm:$0xff] %v1410_v24  ;;  %2757 = vst [vmem:[%s4423_s12 + $0x360] sm:$0xff] %v1763_v25 }
 0x168   : > { %v1414_v26 = vpop.f32.mrf.mxu0  ;;  %v1767_v29 = vpop.f32.mrf.mxu1  ;;  %2039 = vmatmul.mubr.bf16.vlgmr.msra.gmra.mxu0 %v3719_v30  ;;  %2392 = vmatmul.mubr.bf16.vlgmr.msra.gmra.mxu1 %v3719_v30 }
 0x169   : > { %2761 = vst [vmem:[%s4423_s12 + $0x380] sm:$0xff] %v1414_v26  ;;  %2763 = vst [vmem:[%s4423_s12 + $0x390] sm:$0xff] %v1767_v29  ;;  %2048 = vmatprep.mubr.bf16.mxu0 %v3720_v31  ;;  %2399 = vmatprep.mubr.bf16.mxu1 %v3720_v31 }
 0x16a   : > { %v1416_v32 = vpop.f32.mrf.mxu0  ;;  %v1769_v34 = vpop.f32.mrf.mxu1 }
 0x16b   : > { %2762 = vst [vmem:[%s4423_s12 + $0x388] sm:$0xff] %v1416_v32  ;;  %2764 = vst [vmem:[%s4423_s12 + $0x398] sm:$0xff] %v1769_v34 }
 0x16c   : > { %v1418_v35 = vpop.f32.mrf.mxu0  ;;  %v1771_v37 = vpop.f32.mrf.mxu1 }
 0x16d   : > { %2768 = vst [vmem:[%s4423_s12 + $0x3b8] sm:$0xff] %v1418_v35  ;;  %2770 = vst [vmem:[%s4423_s12 + $0x3c8] sm:$0xff] %v1771_v37 }
 0x16e   : > { %v1420_v38 = vpop.f32.mrf.mxu0  ;;  %v1773_v39 = vpop.f32.mrf.mxu1 }
 0x16f   : > { %2769 = vst [vmem:[%s4423_s12 + $0x3c0] sm:$0xff] %v1420_v38  ;;  %2771 = vst [vmem:[%s4423_s12 + $0x3d0] sm:$0xff] %v1773_v39 }
 0x170   : > { %v1424_v40 = vpop.f32.mrf.mxu0  ;;  %v1777_v41 = vpop.f32.mrf.mxu1  ;;  %2049 = vmatmul.mubr.bf16.gmra.mxu0 %v3721_v42  ;;  %2400 = vmatmul.mubr.bf16.gmra.mxu1 %v3721_v42 }
 0x171   : > { %2775 = vst [vmem:[%s4423_s12 + $0x3f0] sm:$0xff] %v1424_v40  ;;  %2777 = vst [vmem:[%s4423_s12 + $0x400] sm:$0xff] %v1777_v41  ;;  %2058 = vmatprep.mubr.bf16.mxu0 %v3722_v45  ;;  %2407 = vmatprep.mubr.bf16.mxu1 %v3722_v45 }
 0x172   : > { %v1426_v46 = vpop.f32.mrf.mxu0  ;;  %v1779_v49 = vpop.f32.mrf.mxu1 }
 0x173   : > { %2776 = vst [vmem:[%s4423_s12 + $0x3f8] sm:$0xff] %v1426_v46  ;;  %2778 = vst [vmem:[%s4423_s12 + $0x408] sm:$0xff] %v1779_v49 }
 0x174   : > { %v1428_v50 = vpop.f32.mrf.mxu0  ;;  %v1781_v51 = vpop.f32.mrf.mxu1 }
 0x175   : > { %2782 = vst [vmem:[%s4423_s12 + $0x428] sm:$0xff] %v1428_v50  ;;  %2784 = vst [vmem:[%s4423_s12 + $0x438] sm:$0xff] %v1781_v51 }
 0x176   : > { %v1430_v56 = vpop.f32.mrf.mxu0  ;;  %v1783_v57 = vpop.f32.mrf.mxu1 }
 0x177   : > { %2783 = vst [vmem:[%s4423_s12 + $0x430] sm:$0xff] %v1430_v56  ;;  %2785 = vst [vmem:[%s4423_s12 + $0x440] sm:$0xff] %v1783_v57 }
 0x178   : > { %v1434_v58 = vpop.f32.mrf.mxu0  ;;  %v1787_v63 = vpop.f32.mrf.mxu1  ;;  %2059 = vmatmul.mubr.bf16.gmra.mxu0 %v3723_v0  ;;  %2408 = vmatmul.mubr.bf16.gmra.mxu1 %v3723_v0 }
 0x179   : > { %2789 = vst [vmem:[%s4423_s12 + $0x460] sm:$0xff] %v1434_v58  ;;  %2791 = vst [vmem:[%s4423_s12 + $0x470] sm:$0xff] %v1787_v63  ;;  %2068 = vmatprep.mubr.bf16.mxu0 %v3724_v1  ;;  %2415 = vmatprep.mubr.bf16.mxu1 %v3724_v1 }
 0x17a   : > { %v1436_v7 = vpop.f32.mrf.mxu0  ;;  %v1789_v8 = vpop.f32.mrf.mxu1 }
 0x17b   : > { %2790 = vst [vmem:[%s4423_s12 + $0x468] sm:$0xff] %v1436_v7  ;;  %2792 = vst [vmem:[%s4423_s12 + $0x478] sm:$0xff] %v1789_v8 }
 0x17c   : > { %v1438_v9 = vpop.f32.mrf.mxu0  ;;  %v1791_v10 = vpop.f32.mrf.mxu1 }
 0x17d   : > { %2796 = vst [vmem:[%s4423_s12 + $0x498] sm:$0xff] %v1438_v9  ;;  %2798 = vst [vmem:[%s4423_s12 + $0x4a8] sm:$0xff] %v1791_v10 }
 0x17e   : > { %v1440_v11 = vpop.f32.mrf.mxu0  ;;  %v1793_v12 = vpop.f32.mrf.mxu1 }
 0x17f   : > { %2797 = vst [vmem:[%s4423_s12 + $0x4a0] sm:$0xff] %v1440_v11  ;;  %2799 = vst [vmem:[%s4423_s12 + $0x4b0] sm:$0xff] %v1793_v12 }
 0x180   : > { %v1444_v13 = vpop.f32.mrf.mxu0  ;;  %v1797_v14 = vpop.f32.mrf.mxu1  ;;  %2069 = vmatmul.mubr.bf16.gmra.mxu0 %v4199_v27  ;;  %2416 = vmatmul.mubr.bf16.gmra.mxu1 %v4199_v27 }
 0x181   : > { %2803 = vst [vmem:[%s4423_s12 + $0x4d0] sm:$0xff] %v1444_v13  ;;  %2805 = vst [vmem:[%s4423_s12 + $0x4e0] sm:$0xff] %v1797_v14  ;;  %2078 = vmatprep.mubr.bf16.mxu0 %v4202_v28  ;;  %2423 = vmatprep.mubr.bf16.mxu1 %v4202_v28 }
 0x182   : > { %v1446_v5 = vpop.f32.mrf.mxu0  ;;  %v1799_v15 = vpop.f32.mrf.mxu1 }
 0x183   : > { %2804 = vst [vmem:[%s4423_s12 + $0x4d8] sm:$0xff] %v1446_v5  ;;  %2806 = vst [vmem:[%s4423_s12 + $0x4e8] sm:$0xff] %v1799_v15 }
 0x184   : > { %v1448_v16 = vpop.f32.mrf.mxu0  ;;  %v1801_v17 = vpop.f32.mrf.mxu1 }
 0x185   : > { %2810 = vst [vmem:[%s4423_s12 + $0x508] sm:$0xff] %v1448_v16  ;;  %2812 = vst [vmem:[%s4423_s12 + $0x518] sm:$0xff] %v1801_v17 }
 0x186   : > { %v1450_v27 = vpop.f32.mrf.mxu0  ;;  %v1803_v18 = vpop.f32.mrf.mxu1 }
 0x187   : > { %2811 = vst [vmem:[%s4423_s12 + $0x510] sm:$0xff] %v1450_v27  ;;  %2813 = vst [vmem:[%s4423_s12 + $0x520] sm:$0xff] %v1803_v18 }
 0x188   : > { %v1454_v19 = vpop.f32.mrf.mxu0  ;;  %v1807_v28 = vpop.f32.mrf.mxu1  ;;  %2079 = vmatmul.mubr.bf16.gmra.mxu0 %v4222_v33  ;;  %2424 = vmatmul.mubr.bf16.gmra.mxu1 %v4222_v33 }
 0x189   : > { %2817 = vst [vmem:[%s4423_s12 + $0x540] sm:$0xff] %v1454_v19  ;;  %2819 = vst [vmem:[%s4423_s12 + $0x550] sm:$0xff] %v1807_v28  ;;  %2088 = vmatprep.mubr.bf16.mxu0 %v4231_v36  ;;  %2431 = vmatprep.mubr.bf16.mxu1 %v4231_v36 }
 0x18a   : > { %v1456_v20 = vpop.f32.mrf.mxu0  ;;  %v1809_v21 = vpop.f32.mrf.mxu1 }
 0x18b   : > { %2818 = vst [vmem:[%s4423_s12 + $0x548] sm:$0xff] %v1456_v20  ;;  %2820 = vst [vmem:[%s4423_s12 + $0x558] sm:$0xff] %v1809_v21 }
 0x18c   : > { %v1458_v22 = vpop.f32.mrf.mxu0  ;;  %v1811_v23 = vpop.f32.mrf.mxu1 }
 0x18d   : > { %2824 = vst [vmem:[%s4423_s12 + $0x578] sm:$0xff] %v1458_v22  ;;  %2826 = vst [vmem:[%s4423_s12 + $0x588] sm:$0xff] %v1811_v23 }
 0x18e   : > { %v1460_v33 = vpop.f32.mrf.mxu0  ;;  %v1813_v24 = vpop.f32.mrf.mxu1 }
 0x18f   : > { %2825 = vst [vmem:[%s4423_s12 + $0x580] sm:$0xff] %v1460_v33  ;;  %2827 = vst [vmem:[%s4423_s12 + $0x590] sm:$0xff] %v1813_v24 }
 0x190   : > { %v1464_v25 = vpop.f32.mrf.mxu0  ;;  %v1817_v36 = vpop.f32.mrf.mxu1  ;;  %2089 = vmatmul.mubr.bf16.gmra.mxu0 %v4258_v43  ;;  %2432 = vmatmul.mubr.bf16.gmra.mxu1 %v4258_v43 }
 0x191   : > { %2831 = vst [vmem:[%s4423_s12 + $0x5b0] sm:$0xff] %v1464_v25  ;;  %2833 = vst [vmem:[%s4423_s12 + $0x5c0] sm:$0xff] %v1817_v36  ;;  %2098 = vmatprep.mubr.bf16.mxu0 %v4261_v44  ;;  %2439 = vmatprep.mubr.bf16.mxu1 %v4261_v44 }
 0x192   : > { %v1466_v26 = vpop.f32.mrf.mxu0  ;;  %v1819_v29 = vpop.f32.mrf.mxu1 }
 0x193   : > { %2832 = vst [vmem:[%s4423_s12 + $0x5b8] sm:$0xff] %v1466_v26  ;;  %2834 = vst [vmem:[%s4423_s12 + $0x5c8] sm:$0xff] %v1819_v29  ;;  %v3725_v26 = vld [vmem:[%s3930_s19 + $0xd0] ss:$8 sps:$4 sm:$0xff]   ;;  %v3726_v29 = vld [vmem:[%s3930_s19 + $0xe4] ss:$8 sps:$4 sm:$0xff]  }
 0x194   : > { %v1468_v30 = vpop.f32.mrf.mxu0  ;;  %v1821_v31 = vpop.f32.mrf.mxu1 }
 0x195   : > { %2838 = vst [vmem:[%s4423_s12 + $0x5e8] sm:$0xff] %v1468_v30  ;;  %2840 = vst [vmem:[%s4423_s12 + $0x5f8] sm:$0xff] %v1821_v31 }
 0x196   : > { %v1470_v43 = vpop.f32.mrf.mxu0  ;;  %v1823_v32 = vpop.f32.mrf.mxu1 }
 0x197   : > { %2839 = vst [vmem:[%s4423_s12 + $0x5f0] sm:$0xff] %v1470_v43  ;;  %2841 = vst [vmem:[%s4423_s12 + $0x600] sm:$0xff] %v1823_v32 }
 0x198   : > { %v1474_v34 = vpop.f32.mrf.mxu0  ;;  %v1827_v44 = vpop.f32.mrf.mxu1  ;;  %2099 = vmatmul.mubr.bf16.gmra.mxu0 %v4277_v47  ;;  %2440 = vmatmul.mubr.bf16.gmra.mxu1 %v4277_v47 }
 0x199   : > { %2845 = vst [vmem:[%s4423_s12 + $0x620] sm:$0xff] %v1474_v34  ;;  %2847 = vst [vmem:[%s4423_s12 + $0x630] sm:$0xff] %v1827_v44  ;;  %2108 = vmatprep.mubr.bf16.mxu0 %v4280_v48  ;;  %2447 = vmatprep.mubr.bf16.mxu1 %v4280_v48 }
 0x19a   : > { %v1476_v35 = vpop.f32.mrf.mxu0  ;;  %v1829_v37 = vpop.f32.mrf.mxu1 }
 0x19b   : > { %2846 = vst [vmem:[%s4423_s12 + $0x628] sm:$0xff] %v1476_v35  ;;  %2848 = vst [vmem:[%s4423_s12 + $0x638] sm:$0xff] %v1829_v37 }
 0x19c   : > { %v1478_v38 = vpop.f32.mrf.mxu0  ;;  %v1831_v39 = vpop.f32.mrf.mxu1 }
 0x19d   : > { %2852 = vst [vmem:[%s4423_s12 + $0x658] sm:$0xff] %v1478_v38  ;;  %2854 = vst [vmem:[%s4423_s12 + $0x668] sm:$0xff] %v1831_v39  ;;  %v3727_v38 = vld [vmem:[%s3930_s19 + $0xe0] ss:$8 sps:$4 sm:$0xff]   ;;  %v3728_v39 = vld [vmem:[%s3930_s19 + $0xf4] ss:$8 sps:$4 sm:$0xff]  }
 0x19e   : > { %v1480_v47 = vpop.f32.mrf.mxu0  ;;  %v1833_v40 = vpop.f32.mrf.mxu1 }
 0x19f   : > { %2853 = vst [vmem:[%s4423_s12 + $0x660] sm:$0xff] %v1480_v47  ;;  %2855 = vst [vmem:[%s4423_s12 + $0x670] sm:$0xff] %v1833_v40 }
 0x1a0   : > { %v1484_v41 = vpop.f32.mrf.mxu0  ;;  %v1837_v48 = vpop.f32.mrf.mxu1  ;;  %2109 = vmatmul.mubr.bf16.gmra.mxu0 %v4297_v52  ;;  %2448 = vmatmul.mubr.bf16.gmra.mxu1 %v4297_v52 }
 0x1a1   : > { %2859 = vst [vmem:[%s4423_s12 + $0x690] sm:$0xff] %v1484_v41  ;;  %2861 = vst [vmem:[%s4423_s12 + $0x6a0] sm:$0xff] %v1837_v48  ;;  %2118 = vmatprep.mubr.bf16.mxu0 %v4300_v53  ;;  %2455 = vmatprep.mubr.bf16.mxu1 %v4300_v53 }
 0x1a2   : > { %v1486_v42 = vpop.f32.mrf.mxu0  ;;  %v1839_v45 = vpop.f32.mrf.mxu1 }
 0x1a3   : > { %2860 = vst [vmem:[%s4423_s12 + $0x698] sm:$0xff] %v1486_v42  ;;  %2862 = vst [vmem:[%s4423_s12 + $0x6a8] sm:$0xff] %v1839_v45 }
 0x1a4   : > { %v1488_v46 = vpop.f32.mrf.mxu0  ;;  %v1841_v49 = vpop.f32.mrf.mxu1 }
 0x1a5   : > { %2866 = vst [vmem:[%s4423_s12 + $0x6c8] sm:$0xff] %v1488_v46  ;;  %2868 = vst [vmem:[%s4423_s12 + $0x6d8] sm:$0xff] %v1841_v49 }
 0x1a6   : > { %v1490_v52 = vpop.f32.mrf.mxu0  ;;  %v1843_v50 = vpop.f32.mrf.mxu1 }
 0x1a7   : > { %2867 = vst [vmem:[%s4423_s12 + $0x6d0] sm:$0xff] %v1490_v52  ;;  %2869 = vst [vmem:[%s4423_s12 + $0x6e0] sm:$0xff] %v1843_v50  ;;  %v3729_v52 = vld [vmem:[%s3930_s19 + $0xf0] ss:$8 sps:$4 sm:$0xff]   ;;  %v3730_v50 = vld [vmem:[%s3930_s19 + $0x104] ss:$8 sps:$4 sm:$0xff]  }
 0x1a8   : > { %v1494_v51 = vpop.f32.mrf.mxu0  ;;  %v1847_v53 = vpop.f32.mrf.mxu1  ;;  %2119 = vmatmul.mubr.bf16.gmra.mxu0 %v4307_v54  ;;  %2456 = vmatmul.mubr.bf16.gmra.mxu1 %v4307_v54 }
 0x1a9   : > { %2873 = vst [vmem:[%s4423_s12 + $0x700] sm:$0xff] %v1494_v51  ;;  %2875 = vst [vmem:[%s4423_s12 + $0x710] sm:$0xff] %v1847_v53  ;;  %2128 = vmatprep.mubr.bf16.mxu0 %v4310_v55  ;;  %2463 = vmatprep.mubr.bf16.mxu1 %v4310_v55 }
 0x1aa   : > { %v1496_v56 = vpop.f32.mrf.mxu0  ;;  %v1849_v57 = vpop.f32.mrf.mxu1 }
 0x1ab   : > { %2874 = vst [vmem:[%s4423_s12 + $0x708] sm:$0xff] %v1496_v56  ;;  %2876 = vst [vmem:[%s4423_s12 + $0x718] sm:$0xff] %v1849_v57 }
 0x1ac   : > { %v1498_v58 = vpop.f32.mrf.mxu0  ;;  %v1851_v63 = vpop.f32.mrf.mxu1 }
 0x1ad   : > { %2880 = vst [vmem:[%s4423_s12 + $0x738] sm:$0xff] %v1498_v58  ;;  %2882 = vst [vmem:[%s4423_s12 + $0x748] sm:$0xff] %v1851_v63 }
 0x1ae   : > { %v1500_v54 = vpop.f32.mrf.mxu0  ;;  %v1853_v0 = vpop.f32.mrf.mxu1 }
 0x1af   : > { %2881 = vst [vmem:[%s4423_s12 + $0x740] sm:$0xff] %v1500_v54  ;;  %2883 = vst [vmem:[%s4423_s12 + $0x750] sm:$0xff] %v1853_v0 }
 0x1b0   : > { %v1504_v1 = vpop.f32.mrf.mxu0  ;;  %v1857_v55 = vpop.f32.mrf.mxu1  ;;  %2129 = vmatmul.mubr.bf16.gmra.mxu0 %v4326_v59  ;;  %2464 = vmatmul.mubr.bf16.gmra.mxu1 %v4326_v59 }
 0x1b1   : > { %2887 = vst [vmem:[%s4423_s12 + $0x770] sm:$0xff] %v1504_v1  ;;  %2889 = vst [vmem:[%s4423_s12 + $0x780] sm:$0xff] %v1857_v55  ;;  %2138 = vmatprep.mubr.bf16.mxu0 %v4329_v60  ;;  %2471 = vmatprep.mubr.bf16.mxu1 %v4329_v60  ;;  %v3731_v1 = vld [vmem:[%s3930_s19 + $0x100] ss:$8 sps:$4 sm:$0xff]   ;;  %v3732_v55 = vld [vmem:[%s3930_s19 + $0x114] ss:$8 sps:$4 sm:$0xff]  }
 0x1b2   : > { %v1506_v7 = vpop.f32.mrf.mxu0  ;;  %v1859_v8 = vpop.f32.mrf.mxu1 }
 0x1b3   : > { %2888 = vst [vmem:[%s4423_s12 + $0x778] sm:$0xff] %v1506_v7  ;;  %2890 = vst [vmem:[%s4423_s12 + $0x788] sm:$0xff] %v1859_v8 }
 0x1b4   : > { %v1508_v9 = vpop.f32.mrf.mxu0  ;;  %v1861_v10 = vpop.f32.mrf.mxu1 }
 0x1b5   : > { %2894 = vst [vmem:[%s4423_s12 + $0x7a8] sm:$0xff] %v1508_v9  ;;  %2896 = vst [vmem:[%s4423_s12 + $0x7b8] sm:$0xff] %v1861_v10 }
 0x1b6   : > { %v1510_v59 = vpop.f32.mrf.mxu0  ;;  %v1863_v11 = vpop.f32.mrf.mxu1 }
 0x1b7   : > { %2895 = vst [vmem:[%s4423_s12 + $0x7b0] sm:$0xff] %v1510_v59  ;;  %2897 = vst [vmem:[%s4423_s12 + $0x7c0] sm:$0xff] %v1863_v11 }
 0x1b8   : > { %v1514_v12 = vpop.f32.mrf.mxu0  ;;  %v1867_v60 = vpop.f32.mrf.mxu1  ;;  %2139 = vmatmul.mubr.bf16.gmra.mxu0 %v4337_v61  ;;  %2472 = vmatmul.mubr.bf16.gmra.mxu1 %v4337_v61 }
 0x1b9   : > { %2901 = vst [vmem:[%s4423_s12 + $0x7e0] sm:$0xff] %v1514_v12  ;;  %2903 = vst [vmem:[%s4423_s12 + $0x7f0] sm:$0xff] %v1867_v60  ;;  %2148 = vmatprep.mubr.bf16.mxu0 %v4340_v62  ;;  %2479 = vmatprep.mubr.bf16.mxu1 %v4340_v62 }
 0x1ba   : > { %v1516_v13 = vpop.f32.mrf.mxu0  ;;  %v1869_v14 = vpop.f32.mrf.mxu1 }
 0x1bb   : > { %2902 = vst [vmem:[%s4423_s12 + $0x7e8] sm:$0xff] %v1516_v13  ;;  %2904 = vst [vmem:[%s4423_s12 + $0x7f8] sm:$0xff] %v1869_v14  ;;  %v3733_v13 = vld [vmem:[%s3930_s19 + $0x110] ss:$8 sps:$4 sm:$0xff]   ;;  %v3734_v14 = vld [vmem:[%s3930_s19 + $0x124] ss:$8 sps:$4 sm:$0xff]  }
 0x1bc   : > { %v1518_v5 = vpop.f32.mrf.mxu0  ;;  %v1871_v15 = vpop.f32.mrf.mxu1 }
 0x1bd   : > { %2908 = vst [vmem:[%s4423_s12 + $0x818] sm:$0xff] %v1518_v5  ;;  %2910 = vst [vmem:[%s4423_s12 + $0x828] sm:$0xff] %v1871_v15 }
 0x1be   : > { %v1520_v61 = vpop.f32.mrf.mxu0  ;;  %v1873_v16 = vpop.f32.mrf.mxu1 }
 0x1bf   : > { %2909 = vst [vmem:[%s4423_s12 + $0x820] sm:$0xff] %v1520_v61  ;;  %2911 = vst [vmem:[%s4423_s12 + $0x830] sm:$0xff] %v1873_v16 }
 0x1c0   : > { %v1524_v17 = vpop.f32.mrf.mxu0  ;;  %v1877_v62 = vpop.f32.mrf.mxu1  ;;  %2149 = vmatmul.mubr.bf16.gmra.mxu0 %v4356_v2  ;;  %2480 = vmatmul.mubr.bf16.gmra.mxu1 %v4356_v2 }
 0x1c1   : > { %2915 = vst [vmem:[%s4423_s12 + $0x850] sm:$0xff] %v1524_v17  ;;  %2917 = vst [vmem:[%s4423_s12 + $0x860] sm:$0xff] %v1877_v62  ;;  %2158 = vmatprep.mubr.bf16.mxu0 %v4359_v3  ;;  %2487 = vmatprep.mubr.bf16.mxu1 %v4359_v3 }
 0x1c2   : > { %v1526_v27 = vpop.f32.mrf.mxu0  ;;  %v1879_v18 = vpop.f32.mrf.mxu1 }
 0x1c3   : > { %2916 = vst [vmem:[%s4423_s12 + $0x858] sm:$0xff] %v1526_v27  ;;  %2918 = vst [vmem:[%s4423_s12 + $0x868] sm:$0xff] %v1879_v18 }
 0x1c4   : > { %v1528_v19 = vpop.f32.mrf.mxu0  ;;  %v1881_v28 = vpop.f32.mrf.mxu1 }
 0x1c5   : > { %2922 = vst [vmem:[%s4423_s12 + $0x888] sm:$0xff] %v1528_v19  ;;  %2924 = vst [vmem:[%s4423_s12 + $0x898] sm:$0xff] %v1881_v28  ;;  %v3735_v19 = vld [vmem:[%s3930_s19 + $0x120] ss:$8 sps:$4 sm:$0xff]   ;;  %v3736_v28 = vld [vmem:[%s3930_s19 + $0x134] ss:$8 sps:$4 sm:$0xff]  }
 0x1c6   : > { %v1530_v2 = vpop.f32.mrf.mxu0  ;;  %v1883_v20 = vpop.f32.mrf.mxu1 }
 0x1c7   : > { %2923 = vst [vmem:[%s4423_s12 + $0x890] sm:$0xff] %v1530_v2  ;;  %2925 = vst [vmem:[%s4423_s12 + $0x8a0] sm:$0xff] %v1883_v20 }
 0x1c8   : > { %v1534_v21 = vpop.f32.mrf.mxu0  ;;  %v1887_v3 = vpop.f32.mrf.mxu1  ;;  %2159 = vmatmul.mubr.bf16.gmra.mxu0 %v4367_v4  ;;  %2488 = vmatmul.mubr.bf16.gmra.mxu1 %v4367_v4 }
 0x1c9   : > { %2929 = vst [vmem:[%s4423_s12 + $0x8c0] sm:$0xff] %v1534_v21  ;;  %2931 = vst [vmem:[%s4423_s12 + $0x8d0] sm:$0xff] %v1887_v3  ;;  %2168 = vmatprep.mubr.bf16.mxu0 %v4370_v6  ;;  %2495 = vmatprep.mubr.bf16.mxu1 %v4370_v6 }
 0x1ca   : > { %v1536_v22 = vpop.f32.mrf.mxu0  ;;  %v1889_v23 = vpop.f32.mrf.mxu1 }
 0x1cb   : > { %2930 = vst [vmem:[%s4423_s12 + $0x8c8] sm:$0xff] %v1536_v22  ;;  %2932 = vst [vmem:[%s4423_s12 + $0x8d8] sm:$0xff] %v1889_v23 }
 0x1cc   : > { %v1538_v33 = vpop.f32.mrf.mxu0  ;;  %v1891_v24 = vpop.f32.mrf.mxu1 }
 0x1cd   : > { %2936 = vst [vmem:[%s4423_s12 + $0x8f8] sm:$0xff] %v1538_v33  ;;  %2938 = vst [vmem:[%s4423_s12 + $0x908] sm:$0xff] %v1891_v24 }
 0x1ce   : > { %v1540_v4 = vpop.f32.mrf.mxu0  ;;  %v1893_v25 = vpop.f32.mrf.mxu1 }
 0x1cf   : > { %2937 = vst [vmem:[%s4423_s12 + $0x900] sm:$0xff] %v1540_v4  ;;  %2939 = vst [vmem:[%s4423_s12 + $0x910] sm:$0xff] %v1893_v25  ;;  %v3737_v4 = vld [vmem:[%s3930_s19 + $0x130] ss:$8 sps:$4 sm:$0xff]   ;;  %v3738_v25 = vld [vmem:[%s3930_s19 + $0x144] ss:$8 sps:$4 sm:$0xff]  }
 0x1d0   : > { %v1544_v36 = vpop.f32.mrf.mxu0  ;;  %v1897_v6 = vpop.f32.mrf.mxu1  ;;  %2169 = vmatmul.mubr.bf16.gmra.mxu0 %v3725_v26  ;;  %2496 = vmatmul.mubr.bf16.gmra.mxu1 %v3725_v26 }
 0x1d1   : > { %2943 = vst [vmem:[%s4423_s12 + $0x930] sm:$0xff] %v1544_v36  ;;  %2945 = vst [vmem:[%s4423_s12 + $0x940] sm:$0xff] %v1897_v6  ;;  %2178 = vmatprep.mubr.bf16.mxu0 %v3726_v29  ;;  %2503 = vmatprep.mubr.bf16.mxu1 %v3726_v29 }
 0x1d2   : > { %v1546_v30 = vpop.f32.mrf.mxu0  ;;  %v1899_v31 = vpop.f32.mrf.mxu1 }
 0x1d3   : > { %2944 = vst [vmem:[%s4423_s12 + $0x938] sm:$0xff] %v1546_v30  ;;  %2946 = vst [vmem:[%s4423_s12 + $0x948] sm:$0xff] %v1899_v31 }
 0x1d4   : > { %v1548_v43 = vpop.f32.mrf.mxu0  ;;  %v1901_v32 = vpop.f32.mrf.mxu1 }
 0x1d5   : > { %2950 = vst [vmem:[%s4423_s12 + $0x968] sm:$0xff] %v1548_v43  ;;  %2952 = vst [vmem:[%s4423_s12 + $0x978] sm:$0xff] %v1901_v32 }
 0x1d6   : > { %v1550_v34 = vpop.f32.mrf.mxu0  ;;  %v1903_v44 = vpop.f32.mrf.mxu1 }
 0x1d7   : > { %2951 = vst [vmem:[%s4423_s12 + $0x970] sm:$0xff] %v1550_v34  ;;  %2953 = vst [vmem:[%s4423_s12 + $0x980] sm:$0xff] %v1903_v44  ;;  %v3739_v34 = vld [vmem:[%s3930_s19 + $0x140] ss:$8 sps:$4 sm:$0xff]   ;;  %v3740_v44 = vld [vmem:[%s3930_s19 + $0x154] ss:$8 sps:$4 sm:$0xff]  }
 0x1d8   : > { %v1554_v35 = vpop.f32.mrf.mxu0  ;;  %v1907_v37 = vpop.f32.mrf.mxu1  ;;  %2179 = vmatmul.mubr.bf16.gmra.mxu0 %v3727_v38  ;;  %2504 = vmatmul.mubr.bf16.gmra.mxu1 %v3727_v38 }
 0x1d9   : > { %2957 = vst [vmem:[%s4423_s12 + $0x9a0] sm:$0xff] %v1554_v35  ;;  %2959 = vst [vmem:[%s4423_s12 + $0x9b0] sm:$0xff] %v1907_v37  ;;  %2188 = vmatprep.mubr.bf16.mxu0 %v3728_v39  ;;  %2511 = vmatprep.mubr.bf16.mxu1 %v3728_v39 }
 0x1da   : > { %v1556_v47 = vpop.f32.mrf.mxu0  ;;  %v1909_v40 = vpop.f32.mrf.mxu1 }
 0x1db   : > { %2958 = vst [vmem:[%s4423_s12 + $0x9a8] sm:$0xff] %v1556_v47  ;;  %2960 = vst [vmem:[%s4423_s12 + $0x9b8] sm:$0xff] %v1909_v40 }
 0x1dc   : > { %v1558_v41 = vpop.f32.mrf.mxu0  ;;  %v1911_v48 = vpop.f32.mrf.mxu1 }
 0x1dd   : > { %2964 = vst [vmem:[%s4423_s12 + $0x9d8] sm:$0xff] %v1558_v41  ;;  %2966 = vst [vmem:[%s4423_s12 + $0x9e8] sm:$0xff] %v1911_v48 }
 0x1de   : > { %v1560_v42 = vpop.f32.mrf.mxu0  ;;  %v1913_v45 = vpop.f32.mrf.mxu1 }
 0x1df   : > { %2965 = vst [vmem:[%s4423_s12 + $0x9e0] sm:$0xff] %v1560_v42  ;;  %2967 = vst [vmem:[%s4423_s12 + $0x9f0] sm:$0xff] %v1913_v45  ;;  %v3741_v42 = vld [vmem:[%s3930_s19 + $0x150] ss:$8 sps:$4 sm:$0xff]   ;;  %v3742_v45 = vld [vmem:[%s3930_s19 + $0x164] ss:$8 sps:$4 sm:$0xff]  }
 0x1e0   : > { %v1564_v46 = vpop.f32.mrf.mxu0  ;;  %v1917_v49 = vpop.f32.mrf.mxu1  ;;  %2189 = vmatmul.mubr.bf16.gmra.mxu0 %v3729_v52  ;;  %2512 = vmatmul.mubr.bf16.gmra.mxu1 %v3729_v52 }
 0x1e1   : > { %2971 = vst [vmem:[%s4423_s12 + $0xa10] sm:$0xff] %v1564_v46  ;;  %2973 = vst [vmem:[%s4423_s12 + $0xa20] sm:$0xff] %v1917_v49  ;;  %2198 = vmatprep.mubr.bf16.mxu0 %v3730_v50  ;;  %2519 = vmatprep.mubr.bf16.mxu1 %v3730_v50 }
 0x1e2   : > { %v1566_v51 = vpop.f32.mrf.mxu0  ;;  %v1919_v53 = vpop.f32.mrf.mxu1 }
 0x1e3   : > { %2972 = vst [vmem:[%s4423_s12 + $0xa18] sm:$0xff] %v1566_v51  ;;  %2974 = vst [vmem:[%s4423_s12 + $0xa28] sm:$0xff] %v1919_v53 }
 0x1e4   : > { %v1568_v56 = vpop.f32.mrf.mxu0  ;;  %v1921_v57 = vpop.f32.mrf.mxu1 }
 0x1e5   : > { %2978 = vst [vmem:[%s4423_s12 + $0xa48] sm:$0xff] %v1568_v56  ;;  %2980 = vst [vmem:[%s4423_s12 + $0xa58] sm:$0xff] %v1921_v57 }
 0x1e6   : > { %v1570_v58 = vpop.f32.mrf.mxu0  ;;  %v1923_v63 = vpop.f32.mrf.mxu1 }
 0x1e7   : > { %2979 = vst [vmem:[%s4423_s12 + $0xa50] sm:$0xff] %v1570_v58  ;;  %2981 = vst [vmem:[%s4423_s12 + $0xa60] sm:$0xff] %v1923_v63  ;;  %v3743_v58 = vld [vmem:[%s3930_s19 + $0x160] ss:$8 sps:$4 sm:$0xff]   ;;  %v3744_v63 = vld [vmem:[%s3930_s19 + $0x174] ss:$8 sps:$4 sm:$0xff]  }
 0x1e8   : > { %v1574_v54 = vpop.f32.mrf.mxu0  ;;  %v1927_v0 = vpop.f32.mrf.mxu1  ;;  %2199 = vmatmul.mubr.bf16.gmra.mxu0 %v3731_v1  ;;  %2520 = vmatmul.mubr.bf16.gmra.mxu1 %v3731_v1 }
 0x1e9   : > { %2985 = vst [vmem:[%s4423_s12 + $0xa80] sm:$0xff] %v1574_v54  ;;  %2987 = vst [vmem:[%s4423_s12 + $0xa90] sm:$0xff] %v1927_v0  ;;  %2208 = vmatprep.mubr.bf16.mxu0 %v3732_v55  ;;  %2527 = vmatprep.mubr.bf16.mxu1 %v3732_v55 }
 0x1ea   : > { %v1576_v7 = vpop.f32.mrf.mxu0  ;;  %v1929_v8 = vpop.f32.mrf.mxu1 }
 0x1eb   : > { %2986 = vst [vmem:[%s4423_s12 + $0xa88] sm:$0xff] %v1576_v7  ;;  %2988 = vst [vmem:[%s4423_s12 + $0xa98] sm:$0xff] %v1929_v8 }
 0x1ec   : > { %v1578_v9 = vpop.f32.mrf.mxu0  ;;  %v1931_v10 = vpop.f32.mrf.mxu1 }
 0x1ed   : > { %2992 = vst [vmem:[%s4423_s12 + $0xab8] sm:$0xff] %v1578_v9  ;;  %2994 = vst [vmem:[%s4423_s12 + $0xac8] sm:$0xff] %v1931_v10 }
 0x1ee   : > { %v1580_v59 = vpop.f32.mrf.mxu0  ;;  %v1933_v11 = vpop.f32.mrf.mxu1 }
 0x1ef   : > { %2993 = vst [vmem:[%s4423_s12 + $0xac0] sm:$0xff] %v1580_v59  ;;  %2995 = vst [vmem:[%s4423_s12 + $0xad0] sm:$0xff] %v1933_v11  ;;  %v3745_v59 = vld [vmem:[%s3930_s19 + $0x170] ss:$8 sps:$4 sm:$0xff]   ;;  %v3746_v11 = vld [vmem:[%s3930_s19 + $0x184] ss:$8 sps:$4 sm:$0xff]  }
 0x1f0   : > { %v1584_v12 = vpop.f32.mrf.mxu0  ;;  %v1937_v60 = vpop.f32.mrf.mxu1  ;;  %2209 = vmatmul.mubr.bf16.gmra.mxu0 %v3733_v13  ;;  %2528 = vmatmul.mubr.bf16.gmra.mxu1 %v3733_v13 }
 0x1f1   : > { %2999 = vst [vmem:[%s4423_s12 + $0xaf0] sm:$0xff] %v1584_v12  ;;  %3001 = vst [vmem:[%s4423_s12 + $0xb00] sm:$0xff] %v1937_v60  ;;  %2218 = vmatprep.mubr.bf16.mxu0 %v3734_v14  ;;  %2535 = vmatprep.mubr.bf16.mxu1 %v3734_v14 }
 0x1f2   : > { %v1586_v5 = vpop.f32.mrf.mxu0  ;;  %v1939_v15 = vpop.f32.mrf.mxu1 }
 0x1f3   : > { %3000 = vst [vmem:[%s4423_s12 + $0xaf8] sm:$0xff] %v1586_v5  ;;  %3002 = vst [vmem:[%s4423_s12 + $0xb08] sm:$0xff] %v1939_v15 }
 0x1f4   : > { %v1588_v61 = vpop.f32.mrf.mxu0  ;;  %v1941_v16 = vpop.f32.mrf.mxu1 }
 0x1f5   : > { %3006 = vst [vmem:[%s4423_s12 + $0xb28] sm:$0xff] %v1588_v61  ;;  %3008 = vst [vmem:[%s4423_s12 + $0xb38] sm:$0xff] %v1941_v16  ;;  %v3747_v16 = vld [vmem:[%s3930_s19 + $0x180] ss:$8 sps:$4 sm:$0xff]  }
 0x1f6   : > { %v1590_v17 = vpop.f32.mrf.mxu0  ;;  %v1943_v62 = vpop.f32.mrf.mxu1 }
 0x1f7   : > { %3007 = vst [vmem:[%s4423_s12 + $0xb30] sm:$0xff] %v1590_v17  ;;  %3009 = vst [vmem:[%s4423_s12 + $0xb40] sm:$0xff] %v1943_v62  ;;  %v3748_v62 = vld [vmem:[%s3930_s19 + $0x194] ss:$8 sps:$4 sm:$0xff]  }
 0x1f8   : > { %v1594_v27 = vpop.f32.mrf.mxu0  ;;  %v1947_v18 = vpop.f32.mrf.mxu1  ;;  %2219 = vmatmul.mubr.bf16.gmra.mxu0 %v3735_v19  ;;  %2536 = vmatmul.mubr.bf16.gmra.mxu1 %v3735_v19 }
 0x1f9   : > { %3013 = vst [vmem:[%s4423_s12 + $0xb60] sm:$0xff] %v1594_v27  ;;  %3015 = vst [vmem:[%s4423_s12 + $0xb70] sm:$0xff] %v1947_v18  ;;  %2228 = vmatprep.mubr.bf16.mxu0 %v3736_v28  ;;  %2543 = vmatprep.mubr.bf16.mxu1 %v3736_v28 }
 0x1fa   : > { %v1596_v2 = vpop.f32.mrf.mxu0  ;;  %v1949_v20 = vpop.f32.mrf.mxu1 }
 0x1fb   : > { %3014 = vst [vmem:[%s4423_s12 + $0xb68] sm:$0xff] %v1596_v2  ;;  %3016 = vst [vmem:[%s4423_s12 + $0xb78] sm:$0xff] %v1949_v20 }
 0x1fc   : > { %v1598_v21 = vpop.f32.mrf.mxu0  ;;  %v1951_v3 = vpop.f32.mrf.mxu1 }
 0x1fd   : > { %3020 = vst [vmem:[%s4423_s12 + $0xb98] sm:$0xff] %v1598_v21  ;;  %3022 = vst [vmem:[%s4423_s12 + $0xba8] sm:$0xff] %v1951_v3  ;;  %v3749_v3 = vld [vmem:[%s3930_s19 + $0x190] ss:$8 sps:$4 sm:$0xff]  }
 0x1fe   : > { %v1600_v22 = vpop.f32.mrf.mxu0  ;;  %v1953_v23 = vpop.f32.mrf.mxu1 }
 0x1ff   : > { %3021 = vst [vmem:[%s4423_s12 + $0xba0] sm:$0xff] %v1600_v22  ;;  %3023 = vst [vmem:[%s4423_s12 + $0xbb0] sm:$0xff] %v1953_v23  ;;  %v3750_v23 = vld [vmem:[%s3930_s19 + $0x1a4] ss:$8 sps:$4 sm:$0xff]  }
 0x200   : > { %v1604_v33 = vpop.f32.mrf.mxu0  ;;  %v1957_v24 = vpop.f32.mrf.mxu1  ;;  %2229 = vmatmul.mubr.bf16.gmra.mxu0 %v3737_v4  ;;  %2544 = vmatmul.mubr.bf16.gmra.mxu1 %v3737_v4 }
 0x201   : > { %3027 = vst [vmem:[%s4423_s12 + $0xbd0] sm:$0xff] %v1604_v33  ;;  %3029 = vst [vmem:[%s4423_s12 + $0xbe0] sm:$0xff] %v1957_v24  ;;  %2238 = vmatprep.mubr.bf16.mxu0 %v3738_v25  ;;  %2551 = vmatprep.mubr.bf16.mxu1 %v3738_v25 }
 0x202   : > { %v1606_v36 = vpop.f32.mrf.mxu0  ;;  %v1959_v6 = vpop.f32.mrf.mxu1 }
 0x203   : > { %3028 = vst [vmem:[%s4423_s12 + $0xbd8] sm:$0xff] %v1606_v36  ;;  %3030 = vst [vmem:[%s4423_s12 + $0xbe8] sm:$0xff] %v1959_v6 }
 0x204   : > { %v1608_v26 = vpop.f32.mrf.mxu0  ;;  %v1961_v29 = vpop.f32.mrf.mxu1 }
 0x205   : > { %3034 = vst [vmem:[%s4423_s12 + $0xc08] sm:$0xff] %v1608_v26  ;;  %3036 = vst [vmem:[%s4423_s12 + $0xc18] sm:$0xff] %v1961_v29  ;;  %v3751_v29 = vld [vmem:[%s3930_s19 + $0x1a0] ss:$8 sps:$4 sm:$0xff]  }
 0x206   : > { %v1610_v30 = vpop.f32.mrf.mxu0  ;;  %v1963_v31 = vpop.f32.mrf.mxu1 }
 0x207   : > { %3035 = vst [vmem:[%s4423_s12 + $0xc10] sm:$0xff] %v1610_v30  ;;  %3037 = vst [vmem:[%s4423_s12 + $0xc20] sm:$0xff] %v1963_v31  ;;  %v3752_v31 = vld [vmem:[%s3930_s19 + $0x1b4] ss:$8 sps:$4 sm:$0xff]  }
 0x208   : > { %v1614_v43 = vpop.f32.mrf.mxu0  ;;  %v1967_v32 = vpop.f32.mrf.mxu1  ;;  %2239 = vmatmul.mubr.bf16.gmra.mxu0 %v3739_v34  ;;  %2552 = vmatmul.mubr.bf16.gmra.mxu1 %v3739_v34 }
 0x209   : > { %3041 = vst [vmem:[%s4423_s12 + $0xc40] sm:$0xff] %v1614_v43  ;;  %3043 = vst [vmem:[%s4423_s12 + $0xc50] sm:$0xff] %v1967_v32  ;;  %2248 = vmatprep.mubr.bf16.mxu0 %v3740_v44  ;;  %2559 = vmatprep.mubr.bf16.mxu1 %v3740_v44 }
 0x20a   : > { %v1616_v35 = vpop.f32.mrf.mxu0  ;;  %v1969_v37 = vpop.f32.mrf.mxu1 }
 0x20b   : > { %3042 = vst [vmem:[%s4423_s12 + $0xc48] sm:$0xff] %v1616_v35  ;;  %3044 = vst [vmem:[%s4423_s12 + $0xc58] sm:$0xff] %v1969_v37 }
 0x20c   : > { %v1618_v38 = vpop.f32.mrf.mxu0  ;;  %v1971_v39 = vpop.f32.mrf.mxu1 }
 0x20d   : > { %3048 = vst [vmem:[%s4423_s12 + $0xc78] sm:$0xff] %v1618_v38  ;;  %3050 = vst [vmem:[%s4423_s12 + $0xc88] sm:$0xff] %v1971_v39  ;;  %v3753_v39 = vld [vmem:[%s3930_s19 + $0x1b0] ss:$8 sps:$4 sm:$0xff]  }
 0x20e   : > { %v1620_v47 = vpop.f32.mrf.mxu0  ;;  %v1973_v40 = vpop.f32.mrf.mxu1 }
 0x20f   : > { %3049 = vst [vmem:[%s4423_s12 + $0xc80] sm:$0xff] %v1620_v47  ;;  %3051 = vst [vmem:[%s4423_s12 + $0xc90] sm:$0xff] %v1973_v40  ;;  %v3754_v40 = vld [vmem:[%s3930_s19 + $0x1c4] ss:$8 sps:$4 sm:$0xff]  }
 0x210   : > { %v1624_v41 = vpop.f32.mrf.mxu0  ;;  %v1977_v48 = vpop.f32.mrf.mxu1  ;;  %2249 = vmatmul.mubr.bf16.gmra.mxu0 %v3741_v42  ;;  %2560 = vmatmul.mubr.bf16.gmra.mxu1 %v3741_v42 }
 0x211   : > { %3055 = vst [vmem:[%s4423_s12 + $0xcb0] sm:$0xff] %v1624_v41  ;;  %3057 = vst [vmem:[%s4423_s12 + $0xcc0] sm:$0xff] %v1977_v48  ;;  %2258 = vmatprep.mubr.bf16.mxu0 %v3742_v45  ;;  %2567 = vmatprep.mubr.bf16.mxu1 %v3742_v45 }
 0x212   : > { %v1626_v46 = vpop.f32.mrf.mxu0  ;;  %v1979_v49 = vpop.f32.mrf.mxu1 }
 0x213   : > { %3056 = vst [vmem:[%s4423_s12 + $0xcb8] sm:$0xff] %v1626_v46  ;;  %3058 = vst [vmem:[%s4423_s12 + $0xcc8] sm:$0xff] %v1979_v49 }
 0x214   : > { %v1628_v52 = vpop.f32.mrf.mxu0  ;;  %v1981_v50 = vpop.f32.mrf.mxu1 }
 0x215   : > { %3062 = vst [vmem:[%s4423_s12 + $0xce8] sm:$0xff] %v1628_v52  ;;  %3064 = vst [vmem:[%s4423_s12 + $0xcf8] sm:$0xff] %v1981_v50  ;;  %v3755_v50 = vld [vmem:[%s3930_s19 + $0x1c0] ss:$8 sps:$4 sm:$0xff]  }
 0x216   : > { %v1630_v51 = vpop.f32.mrf.mxu0  ;;  %v1983_v53 = vpop.f32.mrf.mxu1 }
 0x217   : > { %3063 = vst [vmem:[%s4423_s12 + $0xcf0] sm:$0xff] %v1630_v51  ;;  %3065 = vst [vmem:[%s4423_s12 + $0xd00] sm:$0xff] %v1983_v53  ;;  %v3756_v53 = vld [vmem:[%s3930_s19 + $0x1d4] ss:$8 sps:$4 sm:$0xff]  }
 0x218   : > { %v1634_v56 = vpop.f32.mrf.mxu0  ;;  %v1987_v57 = vpop.f32.mrf.mxu1  ;;  %2259 = vmatmul.mubr.bf16.gmra.mxu0 %v3743_v58  ;;  %2568 = vmatmul.mubr.bf16.gmra.mxu1 %v3743_v58 }
 0x219   : > { %3069 = vst [vmem:[%s4423_s12 + $0xd20] sm:$0xff] %v1634_v56  ;;  %3071 = vst [vmem:[%s4423_s12 + $0xd30] sm:$0xff] %v1987_v57  ;;  %2268 = vmatprep.mubr.bf16.mxu0 %v3744_v63  ;;  %2575 = vmatprep.mubr.bf16.mxu1 %v3744_v63 }
 0x21a   : > { %v1636_v54 = vpop.f32.mrf.mxu0  ;;  %v1989_v0 = vpop.f32.mrf.mxu1 }
 0x21b   : > { %3070 = vst [vmem:[%s4423_s12 + $0xd28] sm:$0xff] %v1636_v54  ;;  %3072 = vst [vmem:[%s4423_s12 + $0xd38] sm:$0xff] %v1989_v0 }
 0x21c   : > { %v1638_v1 = vpop.f32.mrf.mxu0  ;;  %v1991_v55 = vpop.f32.mrf.mxu1 }
 0x21d   : > { %3076 = vst [vmem:[%s4423_s12 + $0xd58] sm:$0xff] %v1638_v1  ;;  %3078 = vst [vmem:[%s4423_s12 + $0xd68] sm:$0xff] %v1991_v55  ;;  %v3757_v55 = vld [vmem:[%s3930_s19 + $0x1d0] ss:$8 sps:$4 sm:$0xff]  }
 0x21e   : > { %v1640_v7 = vpop.f32.mrf.mxu0  ;;  %v1993_v8 = vpop.f32.mrf.mxu1 }
 0x21f   : > { %3077 = vst [vmem:[%s4423_s12 + $0xd60] sm:$0xff] %v1640_v7  ;;  %3079 = vst [vmem:[%s4423_s12 + $0xd70] sm:$0xff] %v1993_v8  ;;  %v3758_v8 = vld [vmem:[%s3930_s19 + $0x1e4] ss:$8 sps:$4 sm:$0xff]  }
 0x220   : > { %v1644_v9 = vpop.f32.mrf.mxu0  ;;  %v1997_v10 = vpop.f32.mrf.mxu1  ;;  %2269 = vmatmul.mubr.bf16.gmra.mxu0 %v3745_v59  ;;  %2576 = vmatmul.mubr.bf16.gmra.mxu1 %v3745_v59 }
 0x221   : > { %3083 = vst [vmem:[%s4423_s12 + $0xd90] sm:$0xff] %v1644_v9  ;;  %3085 = vst [vmem:[%s4423_s12 + $0xda0] sm:$0xff] %v1997_v10  ;;  %2278 = vmatprep.mubr.bf16.mxu0 %v3746_v11  ;;  %2583 = vmatprep.mubr.bf16.mxu1 %v3746_v11 }
 0x222   : > { %v1646_v12 = vpop.f32.mrf.mxu0  ;;  %v1999_v60 = vpop.f32.mrf.mxu1 }
 0x223   : > { %3084 = vst [vmem:[%s4423_s12 + $0xd98] sm:$0xff] %v1646_v12  ;;  %3086 = vst [vmem:[%s4423_s12 + $0xda8] sm:$0xff] %v1999_v60 }
 0x224   : > { %v1648_v13 = vpop.f32.mrf.mxu0  ;;  %v2001_v14 = vpop.f32.mrf.mxu1 }
 0x225   : > { %3090 = vst [vmem:[%s4423_s12 + $0xdc8] sm:$0xff] %v1648_v13  ;;  %3092 = vst [vmem:[%s4423_s12 + $0xdd8] sm:$0xff] %v2001_v14  ;;  %v3759_v14 = vld [vmem:[%s3930_s19 + $0x1e0] ss:$8 sps:$4 sm:$0xff]  }
 0x226   : > { %v1650_v5 = vpop.f32.mrf.mxu0  ;;  %v2003_v15 = vpop.f32.mrf.mxu1 }
 0x227   : > { %3091 = vst [vmem:[%s4423_s12 + $0xdd0] sm:$0xff] %v1650_v5  ;;  %3093 = vst [vmem:[%s4423_s12 + $0xde0] sm:$0xff] %v2003_v15  ;;  %v3760_v15 = vld [vmem:[%s3930_s19 + $0x1f4] ss:$8 sps:$4 sm:$0xff]  }
 0x228   : > { %v2040_v61 = vpop.f32.mrf.mxu0  ;;  %2279 = vmatmul.mubr.bf16.gmra.mxu0 %v3747_v16  ;;  %v2393_v17 = vpop.f32.mrf.mxu1  ;;  %2584 = vmatmul.mubr.bf16.gmra.mxu1 %v3747_v16 }
 0x229   : > { %2652 = vst [vmem:[%s4423_s12 + $0x20] sm:$0xff] %v2040_v61  ;;  %2655 = vst.msk [vmem:[%s4423_s12 + $0x30] sm:$0xff] %vm2654_vm0, %v2393_v17  ;;  %2288 = vmatprep.mubr.bf16.mxu0 %v3748_v62  ;;  %2591 = vmatprep.mubr.bf16.mxu1 %v3748_v62 }
 0x22a   : > { %v2042_v27 = vpop.f32.mrf.mxu0  ;;  %v2395_v18 = vpop.f32.mrf.mxu1 }
 0x22b   : > { %2653 = vst [vmem:[%s4423_s12 + $0x28] sm:$0xff] %v2042_v27 }
 0x22c   : > { %v2044_v19 = vpop.f32.mrf.mxu0  ;;  %v2396_v28 = vpop.f32.mrf.mxu1 }
 0x22d   : > { %2660 = vst [vmem:[%s4423_s12 + $0x58] sm:$0xff] %v2044_v19  ;;  %2662 = vst.msk [vmem:[%s4423_s12 + $0x68] sm:$0xff] %vm2654_vm0, %v2396_v28  ;;  %v3761_v28 = vld [vmem:[%s3930_s19 + $0x1f0] ss:$8 sps:$4 sm:$0xff]  }
 0x22e   : > { %v2046_v2 = vpop.f32.mrf.mxu0  ;;  %v2398_v20 = vpop.f32.mrf.mxu1 }
 0x22f   : > { %2661 = vst [vmem:[%s4423_s12 + $0x60] sm:$0xff] %v2046_v2 }
 0x230   : > { %v2050_v21 = vpop.f32.mrf.mxu0  ;;  %2289 = vmatmul.mubr.bf16.gmra.mxu0 %v3749_v3  ;;  %v2401_v22 = vpop.f32.mrf.mxu1  ;;  %2592 = vmatmul.mubr.bf16.gmra.mxu1 %v3749_v3 }
 0x231   : > { %2667 = vst [vmem:[%s4423_s12 + $0x90] sm:$0xff] %v2050_v21  ;;  %2669 = vst.msk [vmem:[%s4423_s12 + $0xa0] sm:$0xff] %vm2654_vm0, %v2401_v22  ;;  %2298 = vmatprep.mubr.bf16.mxu0 %v3750_v23  ;;  %2599 = vmatprep.mubr.bf16.mxu1 %v3750_v23 }
 0x232   : > { %v2052_v33 = vpop.f32.mrf.mxu0  ;;  %v2403_v24 = vpop.f32.mrf.mxu1 }
 0x233   : > { %2668 = vst [vmem:[%s4423_s12 + $0x98] sm:$0xff] %v2052_v33 }
 0x234   : > { %v2054_v4 = vpop.f32.mrf.mxu0  ;;  %v2404_v25 = vpop.f32.mrf.mxu1 }
 0x235   : > { %2674 = vst [vmem:[%s4423_s12 + $0xc8] sm:$0xff] %v2054_v4  ;;  %2676 = vst.msk [vmem:[%s4423_s12 + $0xd8] sm:$0xff] %vm2654_vm0, %v2404_v25 }
 0x236   : > { %v2056_v36 = vpop.f32.mrf.mxu0  ;;  %v2406_v6 = vpop.f32.mrf.mxu1 }
 0x237   : > { %2675 = vst [vmem:[%s4423_s12 + $0xd0] sm:$0xff] %v2056_v36 }
 0x238   : > { %v2060_v26 = vpop.f32.mrf.mxu0  ;;  %2299 = vmatmul.mubr.bf16.gmra.mxu0 %v3751_v29  ;;  %v2409_v30 = vpop.f32.mrf.mxu1  ;;  %2600 = vmatmul.mubr.bf16.gmra.mxu1 %v3751_v29 }
 0x239   : > { %2681 = vst [vmem:[%s4423_s12 + $0x100] sm:$0xff] %v2060_v26  ;;  %2683 = vst.msk [vmem:[%s4423_s12 + $0x110] sm:$0xff] %vm2654_vm0, %v2409_v30  ;;  %2308 = vmatprep.mubr.bf16.mxu0 %v3752_v31  ;;  %2607 = vmatprep.mubr.bf16.mxu1 %v3752_v31 }
 0x23a   : > { %v2062_v43 = vpop.f32.mrf.mxu0  ;;  %v2411_v32 = vpop.f32.mrf.mxu1 }
 0x23b   : > { %2682 = vst [vmem:[%s4423_s12 + $0x108] sm:$0xff] %v2062_v43 }
 0x23c   : > { %v2064_v34 = vpop.f32.mrf.mxu0  ;;  %v2412_v44 = vpop.f32.mrf.mxu1 }
 0x23d   : > { %2688 = vst [vmem:[%s4423_s12 + $0x138] sm:$0xff] %v2064_v34  ;;  %2690 = vst.msk [vmem:[%s4423_s12 + $0x148] sm:$0xff] %vm2654_vm0, %v2412_v44 }
 0x23e   : > { %v2066_v35 = vpop.f32.mrf.mxu0  ;;  %v2414_v37 = vpop.f32.mrf.mxu1 }
 0x23f   : > { %2689 = vst [vmem:[%s4423_s12 + $0x140] sm:$0xff] %v2066_v35 }
 0x240   : > { %v2070_v38 = vpop.f32.mrf.mxu0  ;;  %2309 = vmatmul.mubr.bf16.gmra.mxu0 %v3753_v39  ;;  %v2417_v47 = vpop.f32.mrf.mxu1  ;;  %2608 = vmatmul.mubr.bf16.gmra.mxu1 %v3753_v39 }
 0x241   : > { %2695 = vst [vmem:[%s4423_s12 + $0x170] sm:$0xff] %v2070_v38  ;;  %2697 = vst.msk [vmem:[%s4423_s12 + $0x180] sm:$0xff] %vm2654_vm0, %v2417_v47  ;;  %2318 = vmatprep.mubr.bf16.mxu0 %v3754_v40  ;;  %2615 = vmatprep.mubr.bf16.mxu1 %v3754_v40 }
 0x242   : > { %v2072_v41 = vpop.f32.mrf.mxu0  ;;  %v2419_v48 = vpop.f32.mrf.mxu1 }
 0x243   : > { %2696 = vst [vmem:[%s4423_s12 + $0x178] sm:$0xff] %v2072_v41 }
 0x244   : > { %v2074_v42 = vpop.f32.mrf.mxu0  ;;  %v2420_v45 = vpop.f32.mrf.mxu1 }
 0x245   : > { %2702 = vst [vmem:[%s4423_s12 + $0x1a8] sm:$0xff] %v2074_v42  ;;  %2704 = vst.msk [vmem:[%s4423_s12 + $0x1b8] sm:$0xff] %vm2654_vm0, %v2420_v45 }
 0x246   : > { %v2076_v46 = vpop.f32.mrf.mxu0  ;;  %v2422_v49 = vpop.f32.mrf.mxu1 }
 0x247   : > { %2703 = vst [vmem:[%s4423_s12 + $0x1b0] sm:$0xff] %v2076_v46 }
 0x248   : > { %v2080_v52 = vpop.f32.mrf.mxu0  ;;  %2319 = vmatmul.mubr.bf16.gmra.mxu0 %v3755_v50  ;;  %v2425_v51 = vpop.f32.mrf.mxu1  ;;  %2616 = vmatmul.mubr.bf16.gmra.mxu1 %v3755_v50 }
 0x249   : > { %2709 = vst [vmem:[%s4423_s12 + $0x1e0] sm:$0xff] %v2080_v52  ;;  %2711 = vst.msk [vmem:[%s4423_s12 + $0x1f0] sm:$0xff] %vm2654_vm0, %v2425_v51  ;;  %2328 = vmatprep.mubr.bf16.mxu0 %v3756_v53  ;;  %2623 = vmatprep.mubr.bf16.mxu1 %v3756_v53 }
 0x24a   : > { %v2082_v56 = vpop.f32.mrf.mxu0  ;;  %v2427_v57 = vpop.f32.mrf.mxu1 }
 0x24b   : > { %2710 = vst [vmem:[%s4423_s12 + $0x1e8] sm:$0xff] %v2082_v56 }
 0x24c   : > { %v2084_v58 = vpop.f32.mrf.mxu0  ;;  %v2428_v63 = vpop.f32.mrf.mxu1 }
 0x24d   : > { %2716 = vst [vmem:[%s4423_s12 + $0x218] sm:$0xff] %v2084_v58  ;;  %2718 = vst.msk [vmem:[%s4423_s12 + $0x228] sm:$0xff] %vm2654_vm0, %v2428_v63 }
 0x24e   : > { %v2086_v54 = vpop.f32.mrf.mxu0  ;;  %v2430_v0 = vpop.f32.mrf.mxu1 }
 0x24f   : > { %2717 = vst [vmem:[%s4423_s12 + $0x220] sm:$0xff] %v2086_v54 }
 0x250   : > { %v2090_v1 = vpop.f32.mrf.mxu0  ;;  %2329 = vmatmul.mubr.bf16.gmra.mxu0 %v3757_v55  ;;  %v2433_v7 = vpop.f32.mrf.mxu1  ;;  %2624 = vmatmul.mubr.bf16.gmra.mxu1 %v3757_v55 }
 0x251   : > { %2723 = vst [vmem:[%s4423_s12 + $0x250] sm:$0xff] %v2090_v1  ;;  %2725 = vst.msk [vmem:[%s4423_s12 + $0x260] sm:$0xff] %vm2654_vm0, %v2433_v7  ;;  %2338 = vmatprep.mubr.bf16.mxu0 %v3758_v8  ;;  %2631 = vmatprep.mubr.bf16.mxu1 %v3758_v8 }
 0x252   : > { %v2092_v9 = vpop.f32.mrf.mxu0  ;;  %v2435_v10 = vpop.f32.mrf.mxu1 }
 0x253   : > { %2724 = vst [vmem:[%s4423_s12 + $0x258] sm:$0xff] %v2092_v9 }
 0x254   : > { %v2094_v59 = vpop.f32.mrf.mxu0  ;;  %v2436_v11 = vpop.f32.mrf.mxu1 }
 0x255   : > { %2730 = vst [vmem:[%s4423_s12 + $0x288] sm:$0xff] %v2094_v59  ;;  %2732 = vst.msk [vmem:[%s4423_s12 + $0x298] sm:$0xff] %vm2654_vm0, %v2436_v11 }
 0x256   : > { %v2096_v12 = vpop.f32.mrf.mxu0  ;;  %v2438_v60 = vpop.f32.mrf.mxu1 }
 0x257   : > { %2731 = vst [vmem:[%s4423_s12 + $0x290] sm:$0xff] %v2096_v12 }
 0x258   : > { %v2100_v13 = vpop.f32.mrf.mxu0  ;;  %2339 = vmatmul.mubr.bf16.gmra.mxu0 %v3759_v14  ;;  %v2441_v5 = vpop.f32.mrf.mxu1  ;;  %2632 = vmatmul.mubr.bf16.gmra.mxu1 %v3759_v14 }
 0x259   : > { %2737 = vst [vmem:[%s4423_s12 + $0x2c0] sm:$0xff] %v2100_v13  ;;  %2739 = vst.msk [vmem:[%s4423_s12 + $0x2d0] sm:$0xff] %vm2654_vm0, %v2441_v5  ;;  %2348 = vmatprep.mubr.bf16.mxu0 %v3760_v15  ;;  %2639 = vmatprep.mubr.bf16.mxu1 %v3760_v15 }
 0x25a   : > { %v2102_v61 = vpop.f32.mrf.mxu0  ;;  %v2443_v16 = vpop.f32.mrf.mxu1 }
 0x25b   : > { %2738 = vst [vmem:[%s4423_s12 + $0x2c8] sm:$0xff] %v2102_v61 }
 0x25c   : > { %v2104_v17 = vpop.f32.mrf.mxu0  ;;  %v2444_v62 = vpop.f32.mrf.mxu1 }
 0x25d   : > { %2744 = vst [vmem:[%s4423_s12 + $0x2f8] sm:$0xff] %v2104_v17  ;;  %2746 = vst.msk [vmem:[%s4423_s12 + $0x308] sm:$0xff] %vm2654_vm0, %v2444_v62 }
 0x25e   : > { %v2106_v27 = vpop.f32.mrf.mxu0  ;;  %v2446_v18 = vpop.f32.mrf.mxu1 }
 0x25f   : > { %2745 = vst [vmem:[%s4423_s12 + $0x300] sm:$0xff] %v2106_v27 }
 0x260   : > { %v2110_v19 = vpop.f32.mrf.mxu0  ;;  %2349 = vmatmul.mubr.bf16.gmra.mxu0 %v3761_v28  ;;  %v2449_v2 = vpop.f32.mrf.mxu1  ;;  %2640 = vmatmul.mubr.bf16.gmra.mxu1 %v3761_v28 }
 0x261   : > { %2751 = vst [vmem:[%s4423_s12 + $0x330] sm:$0xff] %v2110_v19  ;;  %2753 = vst.msk [vmem:[%s4423_s12 + $0x340] sm:$0xff] %vm2654_vm0, %v2449_v2 }
 0x262   : > { %v2112_v20 = vpop.f32.mrf.mxu0  ;;  %v2451_v21 = vpop.f32.mrf.mxu1 }
 0x263   : > { %2752 = vst [vmem:[%s4423_s12 + $0x338] sm:$0xff] %v2112_v20 }
 0x264   : > { %v2114_v3 = vpop.f32.mrf.mxu0  ;;  %v2452_v22 = vpop.f32.mrf.mxu1 }
 0x265   : > { %2758 = vst [vmem:[%s4423_s12 + $0x368] sm:$0xff] %v2114_v3  ;;  %2760 = vst.msk [vmem:[%s4423_s12 + $0x378] sm:$0xff] %vm2654_vm0, %v2452_v22 }
 0x266   : > { %v2116_v23 = vpop.f32.mrf.mxu0  ;;  %v2454_v33 = vpop.f32.mrf.mxu1 }
 0x267   : > { %2759 = vst [vmem:[%s4423_s12 + $0x370] sm:$0xff] %v2116_v23 }
 0x268   : > { %v2120_v24 = vpop.f32.mrf.mxu0  ;;  %v2457_v4 = vpop.f32.mrf.mxu1 }
 0x269   : > { %2765 = vst [vmem:[%s4423_s12 + $0x3a0] sm:$0xff] %v2120_v24  ;;  %2767 = vst.msk [vmem:[%s4423_s12 + $0x3b0] sm:$0xff] %vm2654_vm0, %v2457_v4 }
 0x26a   : > { %v2122_v25 = vpop.f32.mrf.mxu0  ;;  %v2459_v36 = vpop.f32.mrf.mxu1 }
 0x26b   : > { %2766 = vst [vmem:[%s4423_s12 + $0x3a8] sm:$0xff] %v2122_v25 }
 0x26c   : > { %v2124_v6 = vpop.f32.mrf.mxu0  ;;  %v2460_v26 = vpop.f32.mrf.mxu1 }
 0x26d   : > { %2772 = vst [vmem:[%s4423_s12 + $0x3d8] sm:$0xff] %v2124_v6  ;;  %2774 = vst.msk [vmem:[%s4423_s12 + $0x3e8] sm:$0xff] %vm2654_vm0, %v2460_v26 }
 0x26e   : > { %v2126_v29 = vpop.f32.mrf.mxu0  ;;  %v2462_v30 = vpop.f32.mrf.mxu1 }
 0x26f   : > { %2773 = vst [vmem:[%s4423_s12 + $0x3e0] sm:$0xff] %v2126_v29 }
 0x270   : > { %v2130_v31 = vpop.f32.mrf.mxu0  ;;  %v2465_v43 = vpop.f32.mrf.mxu1 }
 0x271   : > { %2779 = vst [vmem:[%s4423_s12 + $0x410] sm:$0xff] %v2130_v31  ;;  %2781 = vst.msk [vmem:[%s4423_s12 + $0x420] sm:$0xff] %vm2654_vm0, %v2465_v43 }
 0x272   : > { %v2132_v32 = vpop.f32.mrf.mxu0  ;;  %v2467_v34 = vpop.f32.mrf.mxu1 }
 0x273   : > { %2780 = vst [vmem:[%s4423_s12 + $0x418] sm:$0xff] %v2132_v32 }
 0x274   : > { %v2134_v44 = vpop.f32.mrf.mxu0  ;;  %v2468_v35 = vpop.f32.mrf.mxu1 }
 0x275   : > { %2786 = vst [vmem:[%s4423_s12 + $0x448] sm:$0xff] %v2134_v44  ;;  %2788 = vst.msk [vmem:[%s4423_s12 + $0x458] sm:$0xff] %vm2654_vm0, %v2468_v35 }
 0x276   : > { %v2136_v37 = vpop.f32.mrf.mxu0  ;;  %v2470_v38 = vpop.f32.mrf.mxu1 }
 0x277   : > { %2787 = vst [vmem:[%s4423_s12 + $0x450] sm:$0xff] %v2136_v37 }
 0x278   : > { %v2140_v39 = vpop.f32.mrf.mxu0  ;;  %v2473_v47 = vpop.f32.mrf.mxu1 }
 0x279   : > { %2793 = vst [vmem:[%s4423_s12 + $0x480] sm:$0xff] %v2140_v39  ;;  %2795 = vst.msk [vmem:[%s4423_s12 + $0x490] sm:$0xff] %vm2654_vm0, %v2473_v47 }
 0x27a   : > { %v2142_v40 = vpop.f32.mrf.mxu0  ;;  %v2475_v41 = vpop.f32.mrf.mxu1 }
 0x27b   : > { %2794 = vst [vmem:[%s4423_s12 + $0x488] sm:$0xff] %v2142_v40 }
 0x27c   : > { %v2144_v48 = vpop.f32.mrf.mxu0  ;;  %v2476_v42 = vpop.f32.mrf.mxu1 }
 0x27d   : > { %2800 = vst [vmem:[%s4423_s12 + $0x4b8] sm:$0xff] %v2144_v48  ;;  %2802 = vst.msk [vmem:[%s4423_s12 + $0x4c8] sm:$0xff] %vm2654_vm0, %v2476_v42 }
 0x27e   : > { %v2146_v45 = vpop.f32.mrf.mxu0  ;;  %v2478_v46 = vpop.f32.mrf.mxu1 }
 0x27f   : > { %2801 = vst [vmem:[%s4423_s12 + $0x4c0] sm:$0xff] %v2146_v45 }
 0x280   : > { %v2150_v49 = vpop.f32.mrf.mxu0  ;;  %v2481_v52 = vpop.f32.mrf.mxu1 }
 0x281   : > { %2807 = vst [vmem:[%s4423_s12 + $0x4f0] sm:$0xff] %v2150_v49  ;;  %2809 = vst.msk [vmem:[%s4423_s12 + $0x500] sm:$0xff] %vm2654_vm0, %v2481_v52 }
 0x282   : > { %v2152_v50 = vpop.f32.mrf.mxu0  ;;  %v2483_v51 = vpop.f32.mrf.mxu1 }
 0x283   : > { %2808 = vst [vmem:[%s4423_s12 + $0x4f8] sm:$0xff] %v2152_v50 }
 0x284   : > { %v2154_v53 = vpop.f32.mrf.mxu0  ;;  %v2484_v56 = vpop.f32.mrf.mxu1 }
 0x285   : > { %2814 = vst [vmem:[%s4423_s12 + $0x528] sm:$0xff] %v2154_v53  ;;  %2816 = vst.msk [vmem:[%s4423_s12 + $0x538] sm:$0xff] %vm2654_vm0, %v2484_v56 }
 0x286   : > { %v2156_v57 = vpop.f32.mrf.mxu0  ;;  %v2486_v58 = vpop.f32.mrf.mxu1 }
 0x287   : > { %2815 = vst [vmem:[%s4423_s12 + $0x530] sm:$0xff] %v2156_v57 }
 0x288   : > { %v2160_v63 = vpop.f32.mrf.mxu0  ;;  %v2489_v54 = vpop.f32.mrf.mxu1 }
 0x289   : > { %2821 = vst [vmem:[%s4423_s12 + $0x560] sm:$0xff] %v2160_v63  ;;  %2823 = vst.msk [vmem:[%s4423_s12 + $0x570] sm:$0xff] %vm2654_vm0, %v2489_v54 }
 0x28a   : > { %v2162_v0 = vpop.f32.mrf.mxu0  ;;  %v2491_v1 = vpop.f32.mrf.mxu1 }
 0x28b   : > { %2822 = vst [vmem:[%s4423_s12 + $0x568] sm:$0xff] %v2162_v0 }
 0x28c   : > { %v2164_v55 = vpop.f32.mrf.mxu0  ;;  %v2492_v7 = vpop.f32.mrf.mxu1 }
 0x28d   : > { %2828 = vst [vmem:[%s4423_s12 + $0x598] sm:$0xff] %v2164_v55  ;;  %2830 = vst.msk [vmem:[%s4423_s12 + $0x5a8] sm:$0xff] %vm2654_vm0, %v2492_v7 }
 0x28e   : > { %v2166_v8 = vpop.f32.mrf.mxu0  ;;  %v2494_v9 = vpop.f32.mrf.mxu1 }
 0x28f   : > { %2829 = vst [vmem:[%s4423_s12 + $0x5a0] sm:$0xff] %v2166_v8 }
 0x290   : > { %v2170_v10 = vpop.f32.mrf.mxu0  ;;  %v2497_v59 = vpop.f32.mrf.mxu1 }
 0x291   : > { %2835 = vst [vmem:[%s4423_s12 + $0x5d0] sm:$0xff] %v2170_v10  ;;  %2837 = vst.msk [vmem:[%s4423_s12 + $0x5e0] sm:$0xff] %vm2654_vm0, %v2497_v59 }
 0x292   : > { %v2172_v11 = vpop.f32.mrf.mxu0  ;;  %v2499_v12 = vpop.f32.mrf.mxu1 }
 0x293   : > { %2836 = vst [vmem:[%s4423_s12 + $0x5d8] sm:$0xff] %v2172_v11 }
 0x294   : > { %v2174_v60 = vpop.f32.mrf.mxu0  ;;  %v2500_v13 = vpop.f32.mrf.mxu1 }
 0x295   : > { %2842 = vst [vmem:[%s4423_s12 + $0x608] sm:$0xff] %v2174_v60  ;;  %2844 = vst.msk [vmem:[%s4423_s12 + $0x618] sm:$0xff] %vm2654_vm0, %v2500_v13 }
 0x296   : > { %v2176_v14 = vpop.f32.mrf.mxu0  ;;  %v2502_v5 = vpop.f32.mrf.mxu1 }
 0x297   : > { %2843 = vst [vmem:[%s4423_s12 + $0x610] sm:$0xff] %v2176_v14 }
 0x298   : > { %v2180_v15 = vpop.f32.mrf.mxu0  ;;  %v2505_v61 = vpop.f32.mrf.mxu1 }
 0x299   : > { %2849 = vst [vmem:[%s4423_s12 + $0x640] sm:$0xff] %v2180_v15  ;;  %2851 = vst.msk [vmem:[%s4423_s12 + $0x650] sm:$0xff] %vm2654_vm0, %v2505_v61 }
 0x29a   : > { %v2182_v16 = vpop.f32.mrf.mxu0  ;;  %v2507_v17 = vpop.f32.mrf.mxu1 }
 0x29b   : > { %2850 = vst [vmem:[%s4423_s12 + $0x648] sm:$0xff] %v2182_v16 }
 0x29c   : > { %v2184_v62 = vpop.f32.mrf.mxu0  ;;  %v2508_v27 = vpop.f32.mrf.mxu1 }
 0x29d   : > { %2856 = vst [vmem:[%s4423_s12 + $0x678] sm:$0xff] %v2184_v62  ;;  %2858 = vst.msk [vmem:[%s4423_s12 + $0x688] sm:$0xff] %vm2654_vm0, %v2508_v27 }
 0x29e   : > { %v2186_v18 = vpop.f32.mrf.mxu0  ;;  %v2510_v19 = vpop.f32.mrf.mxu1 }
 0x29f   : > { %2857 = vst [vmem:[%s4423_s12 + $0x680] sm:$0xff] %v2186_v18 }
 0x2a0   : > { %v2190_v28 = vpop.f32.mrf.mxu0  ;;  %v2513_v2 = vpop.f32.mrf.mxu1 }
 0x2a1   : > { %2863 = vst [vmem:[%s4423_s12 + $0x6b0] sm:$0xff] %v2190_v28  ;;  %2865 = vst.msk [vmem:[%s4423_s12 + $0x6c0] sm:$0xff] %vm2654_vm0, %v2513_v2 }
 0x2a2   : > { %v2192_v20 = vpop.f32.mrf.mxu0  ;;  %v2515_v21 = vpop.f32.mrf.mxu1 }
 0x2a3   : > { %2864 = vst [vmem:[%s4423_s12 + $0x6b8] sm:$0xff] %v2192_v20 }
 0x2a4   : > { %v2194_v3 = vpop.f32.mrf.mxu0  ;;  %v2516_v22 = vpop.f32.mrf.mxu1 }
 0x2a5   : > { %2870 = vst [vmem:[%s4423_s12 + $0x6e8] sm:$0xff] %v2194_v3  ;;  %2872 = vst.msk [vmem:[%s4423_s12 + $0x6f8] sm:$0xff] %vm2654_vm0, %v2516_v22 }
 0x2a6   : > { %v2196_v23 = vpop.f32.mrf.mxu0  ;;  %v2518_v33 = vpop.f32.mrf.mxu1 }
 0x2a7   : > { %2871 = vst [vmem:[%s4423_s12 + $0x6f0] sm:$0xff] %v2196_v23 }
 0x2a8   : > { %v2200_v24 = vpop.f32.mrf.mxu0  ;;  %v2521_v4 = vpop.f32.mrf.mxu1 }
 0x2a9   : > { %2877 = vst [vmem:[%s4423_s12 + $0x720] sm:$0xff] %v2200_v24  ;;  %2879 = vst.msk [vmem:[%s4423_s12 + $0x730] sm:$0xff] %vm2654_vm0, %v2521_v4 }
 0x2aa   : > { %v2202_v25 = vpop.f32.mrf.mxu0  ;;  %v2523_v36 = vpop.f32.mrf.mxu1 }
 0x2ab   : > { %2878 = vst [vmem:[%s4423_s12 + $0x728] sm:$0xff] %v2202_v25 }
 0x2ac   : > { %v2204_v6 = vpop.f32.mrf.mxu0  ;;  %v2524_v26 = vpop.f32.mrf.mxu1 }
 0x2ad   : > { %2884 = vst [vmem:[%s4423_s12 + $0x758] sm:$0xff] %v2204_v6  ;;  %2886 = vst.msk [vmem:[%s4423_s12 + $0x768] sm:$0xff] %vm2654_vm0, %v2524_v26 }
 0x2ae   : > { %v2206_v29 = vpop.f32.mrf.mxu0  ;;  %v2526_v30 = vpop.f32.mrf.mxu1 }
 0x2af   : > { %2885 = vst [vmem:[%s4423_s12 + $0x760] sm:$0xff] %v2206_v29 }
 0x2b0   : > { %v2210_v31 = vpop.f32.mrf.mxu0  ;;  %v2529_v43 = vpop.f32.mrf.mxu1 }
 0x2b1   : > { %2891 = vst [vmem:[%s4423_s12 + $0x790] sm:$0xff] %v2210_v31  ;;  %2893 = vst.msk [vmem:[%s4423_s12 + $0x7a0] sm:$0xff] %vm2654_vm0, %v2529_v43 }
 0x2b2   : > { %v2212_v32 = vpop.f32.mrf.mxu0  ;;  %v2531_v34 = vpop.f32.mrf.mxu1 }
 0x2b3   : > { %2892 = vst [vmem:[%s4423_s12 + $0x798] sm:$0xff] %v2212_v32 }
 0x2b4   : > { %v2214_v44 = vpop.f32.mrf.mxu0  ;;  %v2532_v35 = vpop.f32.mrf.mxu1 }
 0x2b5   : > { %2898 = vst [vmem:[%s4423_s12 + $0x7c8] sm:$0xff] %v2214_v44  ;;  %2900 = vst.msk [vmem:[%s4423_s12 + $0x7d8] sm:$0xff] %vm2654_vm0, %v2532_v35 }
 0x2b6   : > { %v2216_v37 = vpop.f32.mrf.mxu0  ;;  %v2534_v38 = vpop.f32.mrf.mxu1 }
 0x2b7   : > { %2899 = vst [vmem:[%s4423_s12 + $0x7d0] sm:$0xff] %v2216_v37 }
 0x2b8   : > { %v2220_v39 = vpop.f32.mrf.mxu0  ;;  %v2537_v47 = vpop.f32.mrf.mxu1 }
 0x2b9   : > { %2905 = vst [vmem:[%s4423_s12 + $0x800] sm:$0xff] %v2220_v39  ;;  %2907 = vst.msk [vmem:[%s4423_s12 + $0x810] sm:$0xff] %vm2654_vm0, %v2537_v47 }
 0x2ba   : > { %v2222_v40 = vpop.f32.mrf.mxu0  ;;  %v2539_v41 = vpop.f32.mrf.mxu1 }
 0x2bb   : > { %2906 = vst [vmem:[%s4423_s12 + $0x808] sm:$0xff] %v2222_v40 }
 0x2bc   : > { %v2224_v48 = vpop.f32.mrf.mxu0  ;;  %v2540_v42 = vpop.f32.mrf.mxu1 }
 0x2bd   : > { %2912 = vst [vmem:[%s4423_s12 + $0x838] sm:$0xff] %v2224_v48  ;;  %2914 = vst.msk [vmem:[%s4423_s12 + $0x848] sm:$0xff] %vm2654_vm0, %v2540_v42 }
 0x2be   : > { %v2226_v45 = vpop.f32.mrf.mxu0  ;;  %v2542_v46 = vpop.f32.mrf.mxu1 }
 0x2bf   : > { %2913 = vst [vmem:[%s4423_s12 + $0x840] sm:$0xff] %v2226_v45 }
 0x2c0   : > { %v2230_v49 = vpop.f32.mrf.mxu0  ;;  %v2545_v52 = vpop.f32.mrf.mxu1 }
 0x2c1   : > { %2919 = vst [vmem:[%s4423_s12 + $0x870] sm:$0xff] %v2230_v49  ;;  %2921 = vst.msk [vmem:[%s4423_s12 + $0x880] sm:$0xff] %vm2654_vm0, %v2545_v52 }
 0x2c2   : > { %v2232_v50 = vpop.f32.mrf.mxu0  ;;  %v2547_v51 = vpop.f32.mrf.mxu1 }
 0x2c3   : > { %2920 = vst [vmem:[%s4423_s12 + $0x878] sm:$0xff] %v2232_v50 }
 0x2c4   : > { %v2234_v53 = vpop.f32.mrf.mxu0  ;;  %v2548_v56 = vpop.f32.mrf.mxu1 }
 0x2c5   : > { %2926 = vst [vmem:[%s4423_s12 + $0x8a8] sm:$0xff] %v2234_v53  ;;  %2928 = vst.msk [vmem:[%s4423_s12 + $0x8b8] sm:$0xff] %vm2654_vm0, %v2548_v56 }
 0x2c6   : > { %v2236_v57 = vpop.f32.mrf.mxu0  ;;  %v2550_v58 = vpop.f32.mrf.mxu1 }
 0x2c7   : > { %2927 = vst [vmem:[%s4423_s12 + $0x8b0] sm:$0xff] %v2236_v57 }
 0x2c8   : > { %v2240_v63 = vpop.f32.mrf.mxu0  ;;  %v2553_v54 = vpop.f32.mrf.mxu1 }
 0x2c9   : > { %2933 = vst [vmem:[%s4423_s12 + $0x8e0] sm:$0xff] %v2240_v63  ;;  %2935 = vst.msk [vmem:[%s4423_s12 + $0x8f0] sm:$0xff] %vm2654_vm0, %v2553_v54 }
 0x2ca   : > { %v2242_v0 = vpop.f32.mrf.mxu0  ;;  %v2555_v1 = vpop.f32.mrf.mxu1 }
 0x2cb   : > { %2934 = vst [vmem:[%s4423_s12 + $0x8e8] sm:$0xff] %v2242_v0 }
 0x2cc   : > { %v2244_v55 = vpop.f32.mrf.mxu0  ;;  %v2556_v7 = vpop.f32.mrf.mxu1 }
 0x2cd   : > { %2940 = vst [vmem:[%s4423_s12 + $0x918] sm:$0xff] %v2244_v55  ;;  %2942 = vst.msk [vmem:[%s4423_s12 + $0x928] sm:$0xff] %vm2654_vm0, %v2556_v7 }
 0x2ce   : > { %v2246_v8 = vpop.f32.mrf.mxu0  ;;  %v2558_v9 = vpop.f32.mrf.mxu1 }
 0x2cf   : > { %2941 = vst [vmem:[%s4423_s12 + $0x920] sm:$0xff] %v2246_v8 }
 0x2d0   : > { %v2250_v10 = vpop.f32.mrf.mxu0  ;;  %v2561_v59 = vpop.f32.mrf.mxu1 }
 0x2d1   : > { %2947 = vst [vmem:[%s4423_s12 + $0x950] sm:$0xff] %v2250_v10  ;;  %2949 = vst.msk [vmem:[%s4423_s12 + $0x960] sm:$0xff] %vm2654_vm0, %v2561_v59 }
 0x2d2   : > { %v2252_v11 = vpop.f32.mrf.mxu0  ;;  %v2563_v12 = vpop.f32.mrf.mxu1 }
 0x2d3   : > { %2948 = vst [vmem:[%s4423_s12 + $0x958] sm:$0xff] %v2252_v11 }
 0x2d4   : > { %v2254_v60 = vpop.f32.mrf.mxu0  ;;  %v2564_v13 = vpop.f32.mrf.mxu1 }
 0x2d5   : > { %2954 = vst [vmem:[%s4423_s12 + $0x988] sm:$0xff] %v2254_v60  ;;  %2956 = vst.msk [vmem:[%s4423_s12 + $0x998] sm:$0xff] %vm2654_vm0, %v2564_v13 }
 0x2d6   : > { %v2256_v14 = vpop.f32.mrf.mxu0  ;;  %v2566_v5 = vpop.f32.mrf.mxu1 }
 0x2d7   : > { %2955 = vst [vmem:[%s4423_s12 + $0x990] sm:$0xff] %v2256_v14 }
 0x2d8   : > { %v2260_v15 = vpop.f32.mrf.mxu0  ;;  %v2569_v61 = vpop.f32.mrf.mxu1 }
 0x2d9   : > { %2961 = vst [vmem:[%s4423_s12 + $0x9c0] sm:$0xff] %v2260_v15  ;;  %2963 = vst.msk [vmem:[%s4423_s12 + $0x9d0] sm:$0xff] %vm2654_vm0, %v2569_v61 }
 0x2da   : > { %v2262_v16 = vpop.f32.mrf.mxu0  ;;  %v2571_v17 = vpop.f32.mrf.mxu1 }
 0x2db   : > { %2962 = vst [vmem:[%s4423_s12 + $0x9c8] sm:$0xff] %v2262_v16 }
 0x2dc   : > { %v2264_v62 = vpop.f32.mrf.mxu0  ;;  %v2572_v27 = vpop.f32.mrf.mxu1 }
 0x2dd   : > { %2968 = vst [vmem:[%s4423_s12 + $0x9f8] sm:$0xff] %v2264_v62  ;;  %2970 = vst.msk [vmem:[%s4423_s12 + $0xa08] sm:$0xff] %vm2654_vm0, %v2572_v27 }
 0x2de   : > { %v2266_v18 = vpop.f32.mrf.mxu0  ;;  %v2574_v19 = vpop.f32.mrf.mxu1 }
 0x2df   : > { %2969 = vst [vmem:[%s4423_s12 + $0xa00] sm:$0xff] %v2266_v18 }
 0x2e0   : > { %v2270_v28 = vpop.f32.mrf.mxu0  ;;  %v2577_v2 = vpop.f32.mrf.mxu1 }
 0x2e1   : > { %2975 = vst [vmem:[%s4423_s12 + $0xa30] sm:$0xff] %v2270_v28  ;;  %2977 = vst.msk [vmem:[%s4423_s12 + $0xa40] sm:$0xff] %vm2654_vm0, %v2577_v2 }
 0x2e2   : > { %v2272_v20 = vpop.f32.mrf.mxu0  ;;  %v2579_v21 = vpop.f32.mrf.mxu1 }
 0x2e3   : > { %2976 = vst [vmem:[%s4423_s12 + $0xa38] sm:$0xff] %v2272_v20 }
 0x2e4   : > { %v2274_v3 = vpop.f32.mrf.mxu0  ;;  %v2580_v22 = vpop.f32.mrf.mxu1 }
 0x2e5   : > { %2982 = vst [vmem:[%s4423_s12 + $0xa68] sm:$0xff] %v2274_v3  ;;  %2984 = vst.msk [vmem:[%s4423_s12 + $0xa78] sm:$0xff] %vm2654_vm0, %v2580_v22 }
 0x2e6   : > { %v2276_v23 = vpop.f32.mrf.mxu0  ;;  %v2582_v33 = vpop.f32.mrf.mxu1 }
 0x2e7   : > { %2983 = vst [vmem:[%s4423_s12 + $0xa70] sm:$0xff] %v2276_v23 }
 0x2e8   : > { %v2280_v24 = vpop.f32.mrf.mxu0  ;;  %v2585_v4 = vpop.f32.mrf.mxu1 }
 0x2e9   : > { %2989 = vst [vmem:[%s4423_s12 + $0xaa0] sm:$0xff] %v2280_v24  ;;  %2991 = vst.msk [vmem:[%s4423_s12 + $0xab0] sm:$0xff] %vm2654_vm0, %v2585_v4 }
 0x2ea   : > { %v2282_v25 = vpop.f32.mrf.mxu0  ;;  %v2587_v36 = vpop.f32.mrf.mxu1 }
 0x2eb   : > { %2990 = vst [vmem:[%s4423_s12 + $0xaa8] sm:$0xff] %v2282_v25 }
 0x2ec   : > { %v2284_v6 = vpop.f32.mrf.mxu0  ;;  %v2588_v26 = vpop.f32.mrf.mxu1 }
 0x2ed   : > { %2996 = vst [vmem:[%s4423_s12 + $0xad8] sm:$0xff] %v2284_v6  ;;  %2998 = vst.msk [vmem:[%s4423_s12 + $0xae8] sm:$0xff] %vm2654_vm0, %v2588_v26 }
 0x2ee   : > { %v2286_v29 = vpop.f32.mrf.mxu0  ;;  %v2590_v30 = vpop.f32.mrf.mxu1 }
 0x2ef   : > { %2997 = vst [vmem:[%s4423_s12 + $0xae0] sm:$0xff] %v2286_v29 }
 0x2f0   : > { %v2290_v31 = vpop.f32.mrf.mxu0  ;;  %v2593_v43 = vpop.f32.mrf.mxu1 }
 0x2f1   : > { %3003 = vst [vmem:[%s4423_s12 + $0xb10] sm:$0xff] %v2290_v31  ;;  %3005 = vst.msk [vmem:[%s4423_s12 + $0xb20] sm:$0xff] %vm2654_vm0, %v2593_v43 }
 0x2f2   : > { %v2292_v32 = vpop.f32.mrf.mxu0  ;;  %v2595_v34 = vpop.f32.mrf.mxu1 }
 0x2f3   : > { %3004 = vst [vmem:[%s4423_s12 + $0xb18] sm:$0xff] %v2292_v32 }
 0x2f4   : > { %v2294_v44 = vpop.f32.mrf.mxu0  ;;  %v2596_v35 = vpop.f32.mrf.mxu1 }
 0x2f5   : > { %3010 = vst [vmem:[%s4423_s12 + $0xb48] sm:$0xff] %v2294_v44  ;;  %3012 = vst.msk [vmem:[%s4423_s12 + $0xb58] sm:$0xff] %vm2654_vm0, %v2596_v35 }
 0x2f6   : > { %v2296_v37 = vpop.f32.mrf.mxu0  ;;  %v2598_v38 = vpop.f32.mrf.mxu1 }
 0x2f7   : > { %3011 = vst [vmem:[%s4423_s12 + $0xb50] sm:$0xff] %v2296_v37 }
 0x2f8   : > { %v2300_v39 = vpop.f32.mrf.mxu0  ;;  %v2601_v47 = vpop.f32.mrf.mxu1 }
 0x2f9   : > { %3017 = vst [vmem:[%s4423_s12 + $0xb80] sm:$0xff] %v2300_v39  ;;  %3019 = vst.msk [vmem:[%s4423_s12 + $0xb90] sm:$0xff] %vm2654_vm0, %v2601_v47 }
 0x2fa   : > { %v2302_v40 = vpop.f32.mrf.mxu0  ;;  %v2603_v41 = vpop.f32.mrf.mxu1 }
 0x2fb   : > { %3018 = vst [vmem:[%s4423_s12 + $0xb88] sm:$0xff] %v2302_v40 }
 0x2fc   : > { %v2304_v48 = vpop.f32.mrf.mxu0  ;;  %v2604_v42 = vpop.f32.mrf.mxu1 }
 0x2fd   : > { %3024 = vst [vmem:[%s4423_s12 + $0xbb8] sm:$0xff] %v2304_v48  ;;  %3026 = vst.msk [vmem:[%s4423_s12 + $0xbc8] sm:$0xff] %vm2654_vm0, %v2604_v42 }
 0x2fe   : > { %v2306_v45 = vpop.f32.mrf.mxu0  ;;  %v2606_v46 = vpop.f32.mrf.mxu1 }
 0x2ff   : > { %3025 = vst [vmem:[%s4423_s12 + $0xbc0] sm:$0xff] %v2306_v45 }
 0x300   : > { %v2310_v49 = vpop.f32.mrf.mxu0  ;;  %v2609_v52 = vpop.f32.mrf.mxu1 }
 0x301   : > { %3031 = vst [vmem:[%s4423_s12 + $0xbf0] sm:$0xff] %v2310_v49  ;;  %3033 = vst.msk [vmem:[%s4423_s12 + $0xc00] sm:$0xff] %vm2654_vm0, %v2609_v52 }
 0x302   : > { %v2312_v50 = vpop.f32.mrf.mxu0  ;;  %v2611_v51 = vpop.f32.mrf.mxu1 }
 0x303   : > { %3032 = vst [vmem:[%s4423_s12 + $0xbf8] sm:$0xff] %v2312_v50 }
 0x304   : > { %v2314_v53 = vpop.f32.mrf.mxu0  ;;  %v2612_v56 = vpop.f32.mrf.mxu1 }
 0x305   : > { %3038 = vst [vmem:[%s4423_s12 + $0xc28] sm:$0xff] %v2314_v53  ;;  %3040 = vst.msk [vmem:[%s4423_s12 + $0xc38] sm:$0xff] %vm2654_vm0, %v2612_v56 }
 0x306   : > { %v2316_v57 = vpop.f32.mrf.mxu0  ;;  %v2614_v58 = vpop.f32.mrf.mxu1 }
 0x307   : > { %3039 = vst [vmem:[%s4423_s12 + $0xc30] sm:$0xff] %v2316_v57 }
 0x308   : > { %v2320_v63 = vpop.f32.mrf.mxu0  ;;  %v2617_v54 = vpop.f32.mrf.mxu1 }
 0x309   : > { %3045 = vst [vmem:[%s4423_s12 + $0xc60] sm:$0xff] %v2320_v63  ;;  %3047 = vst.msk [vmem:[%s4423_s12 + $0xc70] sm:$0xff] %vm2654_vm0, %v2617_v54 }
 0x30a   : > { %v2322_v0 = vpop.f32.mrf.mxu0  ;;  %v2619_v1 = vpop.f32.mrf.mxu1 }
 0x30b   : > { %3046 = vst [vmem:[%s4423_s12 + $0xc68] sm:$0xff] %v2322_v0 }
 0x30c   : > { %v2324_v55 = vpop.f32.mrf.mxu0  ;;  %v2620_v7 = vpop.f32.mrf.mxu1 }
 0x30d   : > { %3052 = vst [vmem:[%s4423_s12 + $0xc98] sm:$0xff] %v2324_v55  ;;  %3054 = vst.msk [vmem:[%s4423_s12 + $0xca8] sm:$0xff] %vm2654_vm0, %v2620_v7 }
 0x30e   : > { %v2326_v8 = vpop.f32.mrf.mxu0  ;;  %v2622_v9 = vpop.f32.mrf.mxu1 }
 0x30f   : > { %3053 = vst [vmem:[%s4423_s12 + $0xca0] sm:$0xff] %v2326_v8 }
 0x310   : > { %v2330_v10 = vpop.f32.mrf.mxu0  ;;  %v2625_v59 = vpop.f32.mrf.mxu1 }
 0x311   : > { %3059 = vst [vmem:[%s4423_s12 + $0xcd0] sm:$0xff] %v2330_v10  ;;  %3061 = vst.msk [vmem:[%s4423_s12 + $0xce0] sm:$0xff] %vm2654_vm0, %v2625_v59 }
 0x312   : > { %v2332_v11 = vpop.f32.mrf.mxu0  ;;  %v2627_v12 = vpop.f32.mrf.mxu1 }
 0x313   : > { %3060 = vst [vmem:[%s4423_s12 + $0xcd8] sm:$0xff] %v2332_v11 }
 0x314   : > { %v2334_v60 = vpop.f32.mrf.mxu0  ;;  %v2628_v13 = vpop.f32.mrf.mxu1 }
 0x315   : > { %3066 = vst [vmem:[%s4423_s12 + $0xd08] sm:$0xff] %v2334_v60  ;;  %3068 = vst.msk [vmem:[%s4423_s12 + $0xd18] sm:$0xff] %vm2654_vm0, %v2628_v13 }
 0x316   : > { %v2336_v14 = vpop.f32.mrf.mxu0  ;;  %v2630_v5 = vpop.f32.mrf.mxu1 }
 0x317   : > { %3067 = vst [vmem:[%s4423_s12 + $0xd10] sm:$0xff] %v2336_v14 }
 0x318   : > { %v2340_v15 = vpop.f32.mrf.mxu0  ;;  %v2633_v61 = vpop.f32.mrf.mxu1 }
 0x319   : > { %3073 = vst [vmem:[%s4423_s12 + $0xd40] sm:$0xff] %v2340_v15  ;;  %3075 = vst.msk [vmem:[%s4423_s12 + $0xd50] sm:$0xff] %vm2654_vm0, %v2633_v61 }
 0x31a   : > { %v2342_v16 = vpop.f32.mrf.mxu0  ;;  %v2635_v17 = vpop.f32.mrf.mxu1 }
 0x31b   : > { %3074 = vst [vmem:[%s4423_s12 + $0xd48] sm:$0xff] %v2342_v16 }
 0x31c   : > { %v2344_v62 = vpop.f32.mrf.mxu0  ;;  %v2636_v27 = vpop.f32.mrf.mxu1 }
 0x31d   : > { %3080 = vst [vmem:[%s4423_s12 + $0xd78] sm:$0xff] %v2344_v62  ;;  %3082 = vst.msk [vmem:[%s4423_s12 + $0xd88] sm:$0xff] %vm2654_vm0, %v2636_v27 }
 0x31e   : > { %v2346_v18 = vpop.f32.mrf.mxu0  ;;  %v2638_v19 = vpop.f32.mrf.mxu1 }
 0x31f   : > { %3081 = vst [vmem:[%s4423_s12 + $0xd80] sm:$0xff] %v2346_v18 }
 0x320   : > { %v2350_v28 = vpop.f32.mrf.mxu0  ;;  %v2641_v2 = vpop.f32.mrf.mxu1 }
 0x321   : > { %3087 = vst [vmem:[%s4423_s12 + $0xdb0] sm:$0xff] %v2350_v28  ;;  %3089 = vst.msk [vmem:[%s4423_s12 + $0xdc0] sm:$0xff] %vm2654_vm0, %v2641_v2 }
 0x322   : > { %v2352_v20 = vpop.f32.mrf.mxu0  ;;  %v2643_v21 = vpop.f32.mrf.mxu1 }
 0x323   : > { %3088 = vst [vmem:[%s4423_s12 + $0xdb8] sm:$0xff] %v2352_v20 }
 0x324   : > { %v2354_v3 = vpop.f32.mrf.mxu0  ;;  %v2644_v22 = vpop.f32.mrf.mxu1 }
 0x325   : > { %3094 = vst [vmem:[%s4423_s12 + $0xde8] sm:$0xff] %v2354_v3  ;;  %3096 = vst.msk [vmem:[%s4423_s12 + $0xdf8] sm:$0xff] %vm2654_vm0, %v2644_v22 }
 0x326   : > { %v2356_v23 = vpop.f32.mrf.mxu0  ;;  %v2646_v33 = vpop.f32.mrf.mxu1 }
 0x327   : > { %3095 = vst [vmem:[%s4423_s12 + $0xdf0] sm:$0xff] %v2356_v23 }
 0x328 PF: > { %s15_s14 = sadd.s32 1, %s3840_s14   ;;  %s5058_s9 = smov %s3824_s10 }
 0x329   : > { %p12_p8 = scmp.ge.s32.totalorder %s15_s14, 4   ;;  %s5059_s10 = smov %s3828_s11 }
 0x32a   : > { %s5060_s11 = smov %s3910_s21  ;;  %s5061_s12 = smov %s3836_s13 }
 0x32b   : > { %s5062_s13 = smov %s5064_s16  ;;  %14 = sbr.rel (!%p12_p8) target bundleno = 4 (0x4), region = 71 }
 0x330   :  { %3129 = vsyncpa [#allocation3], 1 }
 0x331   :  { %3131 = vsyncpa [#allocation3 + $0x1], 1 }

</bundles_post_ra>
